<compile_context>
chip_gen: v6e
topology: v6e:2x2x1
jax: 0.10.0
libtpu: 0.0.40
codegen_flags: <defaults>
</compile_context>

<pallas_src>
import jax
import jax.numpy as jnp
from jax.experimental import pallas as pl
from jax.experimental.pallas import tpu as pltpu


# ---------------------------------------------------------------------------
# Pallas kernels
# ---------------------------------------------------------------------------
def _conv_relu_pool_kernel(cols_ref, w_ref, b_ref, o_ref):
    # cols_ref: (4*tm, Kp) bf16, tile-major im2col -- pool quadrant q occupies
    # rows [q*tm, (q+1)*tm).  w_ref: (Kp, Cout) bf16.  b_ref: (1, Cout) f32.
    tm = o_ref.shape[0]
    # ONE MXU fill/drain for all 4 quadrants of this tile.
    acc = jnp.dot(cols_ref[...], w_ref[...], preferred_element_type=jnp.float32)
    # 2x2 max-pool == elementwise max over the 4 quadrant row-groups.
    pooled = jnp.maximum(jnp.maximum(acc[0 * tm:1 * tm], acc[1 * tm:2 * tm]),
                         jnp.maximum(acc[2 * tm:3 * tm], acc[3 * tm:4 * tm]))
    # bias + ReLU applied once on the maxed accumulator (bias shared, ReLU
    # monotone => commutes with the max).
    o_ref[...] = jnp.maximum(pooled + b_ref[...], 0.0)


def _lstm_fc_kernel(feat_ref, wih_ref, blstm_ref, whh_ref, wfc_ref, bfc_ref,
                    out_ref, gx_ref):
    # feat_ref: (T*B, In) f32 with rows in (t, b) order.
    # wih_ref: (In, 4H), whh_ref: (H, 4H), blstm_ref: (1, 4H).
    # wfc_ref: (H, NC), bfc_ref: (1, NC).  gx_ref: VMEM scratch (T*B, 4H).
    B = out_ref.shape[0]
    T = feat_ref.shape[0] // B
    Hs = whh_ref.shape[0]

    # Hoisted input projection: a single MXU dot for all timesteps.
    gx_ref[...] = (jnp.dot(feat_ref[...], wih_ref[...],
                           preferred_element_type=jnp.float32) + blstm_ref[...])

    whh = whh_ref[...]
    h = jnp.zeros((B, Hs), jnp.float32)
    c = jnp.zeros((B, Hs), jnp.float32)
    # T is small & static -> full unroll with concrete row offsets.
    # TODO(synk): for long sequences switch to lax.fori_loop with modest unroll.
    for t in range(T):
        gates = (gx_ref[pl.ds(t * B, B), :]
                 + jnp.dot(h, whh, preferred_element_type=jnp.float32))
        # PyTorch LSTM gate order: i, f, g, o
        i_g = jax.nn.sigmoid(gates[:, 0 * Hs:1 * Hs])
        f_g = jax.nn.sigmoid(gates[:, 1 * Hs:2 * Hs])
        g_g = jnp.tanh(gates[:, 2 * Hs:3 * Hs])
        o_g = jax.nn.sigmoid(gates[:, 3 * Hs:4 * Hs])
        c = f_g * c + i_g * g_g
        h = o_g * jnp.tanh(c)

    # Final Linear fused onto the last hidden state.
    out_ref[...] = (jnp.dot(h, wfc_ref[...], preferred_element_type=jnp.float32)
                    + bfc_ref[...])


# ---------------------------------------------------------------------------
# Wrappers (glue: im2col / layout only; all math runs in the kernels above)
# ---------------------------------------------------------------------------
def conv3x3_relu_pool(x, w_mat, b, *, tm_cap=128):
    """Fused 3x3 same-conv + bias + ReLU + 2x2 max-pool.

    x: (N, H, W, Cin) f32.  w_mat: (Kp, Cout) f32, rows in (ky, kx, cin) order
    (zero-padded to Kp).  b: (1, Cout) f32.  Returns (N, H//2, W//2, Cout) f32.
    """
    N, H, W, C = x.shape
    Kp, Cout = w_mat.shape
    H2, W2 = H // 2, W // 2
    M = N * H2 * W2

    # tm: grid >= 2 whenever M allows (v7x megacore), capped so the merged-dot
    # f32 accumulator (4*tm rows) stays near the 64-vreg register file and the
    # per-step VMEM footprint is v7x (64 MiB) safe.
    tm = min(tm_cap, (M + 1) // 2)
    tm = max(8, ((tm + 7) // 8) * 8)
    Mp = ((M + tm - 1) // tm) * tm
    ntiles = Mp // tm

    # im2col in pool-quadrant order; bf16 to halve DMA (f32 MXU accumulation).
    # TODO(synk): still XLA-materialized in HBM -- see module-level TODO.
    xb = x.astype(jnp.bfloat16)
    xp = jnp.pad(xb, ((0, 0), (1, 1), (1, 1), (0, 0)))
    patches = jnp.stack([xp[:, ky:ky + H, kx:kx + W, :]
                         for ky in range(3) for kx in range(3)], axis=3)   # (N,H,W,9,C)
    patches = patches.reshape(N, H2, 2, W2, 2, 9, C)
    patches = patches.transpose(2, 4, 0, 1, 3, 5, 6)        # (py,px,n,oy,ox,9,c)
    cols = patches.reshape(4, M, 9 * C)
    if Kp > 9 * C:                                          # K pad (e.g. 27 -> 32)
        cols = jnp.pad(cols, ((0, 0), (0, 0), (0, Kp - 9 * C)))
    if Mp > M:
        cols = jnp.pad(cols, ((0, 0), (0, Mp - M), (0, 0)))
    # Tile-major layout: the 4 quadrants of each tm-row tile are contiguous, so
    # each grid step consumes one (4*tm, Kp) slab with a single MXU dot.
    cols = (cols.reshape(4, ntiles, tm, Kp).transpose(1, 0, 2, 3)
                .reshape(ntiles * 4 * tm, Kp))

    wb = w_mat.astype(jnp.bfloat16)
    cost = pl.CostEstimate(
        flops=2 * 4 * Mp * Kp * Cout, transcendentals=0,
        bytes_accessed=cols.size * 2 + wb.size * 2 + b.size * 4 + Mp * Cout * 4)

    out = pl.pallas_call(
        _conv_relu_pool_kernel,
        out_shape=jax.ShapeDtypeStruct((Mp, Cout), jnp.float32),
        grid=(ntiles,),
        in_specs=[
            pl.BlockSpec((4 * tm, Kp), lambda i: (i, 0)),
            pl.BlockSpec((Kp, Cout), lambda i: (0, 0)),
            pl.BlockSpec((1, Cout), lambda i: (0, 0)),
        ],
        out_specs=pl.BlockSpec((tm, Cout), lambda i: (i, 0)),
        compiler_params=pltpu.CompilerParams(
            dimension_semantics=("parallel",),
            vmem_limit_bytes=32 * 1024 * 1024),
        cost_estimate=cost,
    )(cols, wb, b)
    return out[:M].reshape(N, H2, W2, Cout)


def lstm_fc(feat, B, wih, blstm, whh, wfc, bfc):
    """Fused (x@Wih+b) + LSTM recurrence + final Linear.

    feat: (T*B, In) f32, rows in (t, b) order.  Returns (B, NC) f32.
    """
    TB, In = feat.shape
    Hs = whh.shape[0]
    NC = wfc.shape[1]
    T = TB // B

    vspec = pl.BlockSpec(memory_space=pltpu.MemorySpace.VMEM)
    cost = pl.CostEstimate(
        flops=2 * TB * In * 4 * Hs + T * 2 * B * Hs * 4 * Hs + 2 * B * Hs * NC,
        transcendentals=TB * 5 * Hs,
        bytes_accessed=4 * (feat.size + wih.size + blstm.size + whh.size
                            + wfc.size + bfc.size + B * NC))

    return pl.pallas_call(
        _lstm_fc_kernel,
        out_shape=jax.ShapeDtypeStruct((B, NC), jnp.float32),
        in_specs=[vspec] * 6,
        out_specs=vspec,
        scratch_shapes=[pltpu.VMEM((TB, 4 * Hs), jnp.float32)],
        compiler_params=pltpu.CompilerParams(vmem_limit_bytes=32 * 1024 * 1024),
        cost_estimate=cost,
    )(feat, wih, blstm, whh, wfc, bfc)


# ---------------------------------------------------------------------------
# Parameters (PyTorch-equivalent init) and full forward
# ---------------------------------------------------------------------------
def init_params(key, hidden_size, num_classes, H, W):
    H4, W4 = H // 4, W // 4
    cnn_output_size = 32 * H4 * W4
    ks = jax.random.split(key, 10)

    def u(k, shape, fan_in):
        bound = 1.0 / jnp.sqrt(jnp.float32(fan_in))
        return jax.random.uniform(k, shape, jnp.float32, -bound, bound)

    params = {}
    # conv1: torch weight (16, 3, 3, 3) -> (ky,kx,cin,cout) -> (27,16) -> K pad 32
    w1 = u(ks[0], (16, 3, 3, 3), 3 * 9)
    w1m = jnp.transpose(w1, (2, 3, 1, 0)).reshape(27, 16)
    params["w1"] = jnp.pad(w1m, ((0, 5), (0, 0)))
    params["b1"] = u(ks[1], (1, 16), 3 * 9)
    # conv2: torch weight (32, 16, 3, 3) -> (144, 32)
    w2 = u(ks[2], (32, 16, 3, 3), 16 * 9)
    params["w2"] = jnp.transpose(w2, (2, 3, 1, 0)).reshape(144, 32)
    params["b2"] = u(ks[3], (1, 32), 16 * 9)

    Hs = hidden_size
    wih = u(ks[4], (4 * Hs, cnn_output_size), Hs)        # torch weight_ih_l0 (cols: c,oy,ox)
    whh = u(ks[5], (4 * Hs, Hs), Hs)                     # torch weight_hh_l0
    bih = u(ks[6], (4 * Hs,), Hs)
    bhh = u(ks[7], (4 * Hs,), Hs)
    # One-time column permutation into the conv output's natural (oy, ox, c)
    # order so the runtime feature flatten is a pure reshape (no transpose).
    wih_nat = (wih.reshape(4 * Hs, 32, H4, W4).transpose(0, 2, 3, 1)
                  .reshape(4 * Hs, cnn_output_size))
    params["wih"] = wih_nat.T                            # (In_natural, 4H) for kernels
    params["wih_torch"] = wih.T                          # (In_torch, 4H), reference only
    params["whh"] = whh.T                                # (H, 4H)
    params["blstm"] = (bih + bhh).reshape(1, 4 * Hs)

    wfc = u(ks[8], (num_classes, Hs), Hs)                # torch fc.weight
    params["wfc"] = wfc.T
    params["bfc"] = u(ks[9], (1, num_classes), Hs)
    return params


def cnn_lstm_forward(params, x):
    # x: (B, T, C, H, W) float32 (PyTorch NCHW frames)
    B, T, C, H, W = x.shape
    assert H % 4 == 0 and W % 4 == 0, "H, W must be multiples of 4 (two 2x2 pools)"
    # (t, b)-major NHWC frames -> feat comes out t-major, no gx transpose later.
    frames = x.transpose(1, 0, 3, 4, 2).reshape(T * B, H, W, C)
    y = conv3x3_relu_pool(frames, params["w1"], params["b1"])     # (TB, H/2, W/2, 16)
    y = conv3x3_relu_pool(y, params["w2"], params["b2"])          # (TB, H/4, W/4, 32)
    feat = y.reshape(T * B, -1)        # natural (oy,ox,c) order; Wih rows pre-permuted
    return lstm_fc(feat, B, params["wih"], params["blstm"], params["whh"],
                   params["wfc"], params["bfc"])


def reference_forward(params, x):
    # Pure-JAX f32 reference with the same math as the PyTorch module
    # (torch-order feature flatten + torch-order Wih).
    B, T, C, H, W = x.shape
    frames = x.reshape(B * T, C, H, W).transpose(0, 2, 3, 1)

    def conv(z, wm, b):
        N, h, w, c = z.shape
        zp = jnp.pad(z, ((0, 0), (1, 1), (1, 1), (0, 0)))
        cols = jnp.stack([zp[:, ky:ky + h, kx:kx + w, :]
                          for ky in range(3) for kx in range(3)],
                         axis=3).reshape(N * h * w, 9 * c)
        out = jnp.maximum(jnp.dot(cols, wm[:9 * c],
                                  preferred_element_type=jnp.float32) + b, 0.0)
        return out.reshape(N, h, w, wm.shape[1])

    def pool(z):
        N, h, w, c = z.shape
        return z.reshape(N, h // 2, 2, w // 2, 2, c).max(axis=(2, 4))

    y = pool(conv(frames, params["w1"], params["b1"]))
    y = pool(conv(y, params["w2"], params["b2"]))
    feat = y.transpose(0, 3, 1, 2).reshape(B, T, -1)     # torch .view(batch, -1) order
    Hs = params["whh"].shape[0]

    def step(carry, xt):
        h, c = carry
        gates = (jnp.dot(xt, params["wih_torch"], preferred_element_type=jnp.float32)
                 + jnp.dot(h, params["whh"], preferred_element_type=jnp.float32)
                 + params["blstm"])
        i = jax.nn.sigmoid(gates[:, 0 * Hs:1 * Hs])
        f = jax.nn.sigmoid(gates[:, 1 * Hs:2 * Hs])
        g = jnp.tanh(gates[:, 2 * Hs:3 * Hs])
        o = jax.nn.sigmoid(gates[:, 3 * Hs:4 * Hs])
        c = f * c + i * g
        h = o * jnp.tanh(c)
        return (h, c), None

    h0 = jnp.zeros((B, Hs), jnp.float32)
    (h, _), _ = jax.lax.scan(step, (h0, h0), feat.transpose(1, 0, 2))
    return jnp.dot(h, params["wfc"],
                   preferred_element_type=jnp.float32) + params["bfc"]


if __name__ == "__main__":
    key = jax.random.PRNGKey(0)
    kx, kp = jax.random.split(key)
    B, T, C, H, W = 2, 4, 3, 16, 16          # cnn_output_size = 32*4*4 = 512
    hidden_size, num_classes = 32, 5

    x = jax.random.normal(kx, (B, T, C, H, W), jnp.float32)
    params = init_params(kp, hidden_size, num_classes, H, W)

    out = jax.jit(cnn_lstm_forward)(params, x)
    out = jax.block_until_ready(out)
    assert out.shape == (B, num_classes)

    ref = reference_forward(params, x)
    assert bool(jnp.allclose(out, ref, rtol=2e-2, atol=2e-2)), (out, ref)

    print("KERNEL_OK")
</pallas_src>

<mosaic_0001>
module attributes {stable_mosaic.version = 11 : i64} {
  func.func @_conv_relu_pool_kernel(%arg0: i32, %arg1: memref<512x32xbf16, #tpu.memory_space<vmem>>, %arg2: memref<32x16xbf16, #tpu.memory_space<vmem>>, %arg3: memref<1x16xf32, #tpu.memory_space<vmem>>, %arg4: memref<128x16xf32, #tpu.memory_space<vmem>>) attributes {dimension_semantics = [#tpu.dimension_semantics<parallel>], iteration_bounds = array<i64: 4>, scalar_prefetch = 0 : i64, scratch_operands = 0 : i64, tpu.core_type = #tpu.core_type<tc>, window_params = [{transform_indices = @transform_0, window_bounds = array<i64: 512, 32>}, {pipeline_mode = #tpu.pipeline_mode<synchronous>, transform_indices = @transform_1, window_bounds = array<i64: 32, 16>}, {pipeline_mode = #tpu.pipeline_mode<synchronous>, transform_indices = @transform_2, window_bounds = array<i64: 1, 16>}, {transform_indices = @transform_3, window_bounds = array<i64: 128, 16>}]} {
    %c0 = arith.constant 0 : index
    %c0_0 = arith.constant 0 : index
    %0 = vector.load %arg1[%c0, %c0_0] : memref<512x32xbf16, #tpu.memory_space<vmem>>, vector<512x32xbf16>
    %c0_1 = arith.constant 0 : index
    %c0_2 = arith.constant 0 : index
    %1 = vector.load %arg2[%c0_1, %c0_2] : memref<32x16xbf16, #tpu.memory_space<vmem>>, vector<32x16xbf16>
    %cst = arith.constant dense<0.000000e+00> : vector<512x16xf32>
    %2 = tpu.matmul %0, %1, %cst {dimension_numbers = #tpu.dot_dimension_numbers<[1], [0], [0], [1], [0, 0, 1, 1], [], []>} : vector<512x32xbf16>, vector<32x16xbf16>, vector<512x16xf32> -> vector<512x16xf32>
    %3 = vector.extract_strided_slice %2 {offsets = [0, 0], sizes = [128, 16], strides = [1, 1]} : vector<512x16xf32> to vector<128x16xf32>
    %4 = vector.extract_strided_slice %2 {offsets = [128, 0], sizes = [128, 16], strides = [1, 1]} : vector<512x16xf32> to vector<128x16xf32>
    %5 = arith.maximumf %3, %4 : vector<128x16xf32>
    %6 = vector.extract_strided_slice %2 {offsets = [256, 0], sizes = [128, 16], strides = [1, 1]} : vector<512x16xf32> to vector<128x16xf32>
    %7 = vector.extract_strided_slice %2 {offsets = [384, 0], sizes = [128, 16], strides = [1, 1]} : vector<512x16xf32> to vector<128x16xf32>
    %8 = arith.maximumf %6, %7 : vector<128x16xf32>
    %9 = arith.maximumf %5, %8 : vector<128x16xf32>
    %c0_3 = arith.constant 0 : index
    %c0_4 = arith.constant 0 : index
    %10 = vector.load %arg3[%c0_3, %c0_4] : memref<1x16xf32, #tpu.memory_space<vmem>>, vector<1x16xf32>
    %11 = vector.broadcast %10 : vector<1x16xf32> to vector<128x16xf32>
    %12 = arith.addf %9, %11 : vector<128x16xf32>
    %cst_5 = arith.constant 0.000000e+00 : f32
    %13 = vector.broadcast %cst_5 : f32 to vector<128x16xf32>
    %14 = arith.maximumf %12, %13 : vector<128x16xf32>
    %c0_6 = arith.constant 0 : index
    %c0_7 = arith.constant 0 : index
    %15 = vector.load %arg4[%c0_6, %c0_7] : memref<128x16xf32, #tpu.memory_space<vmem>>, vector<128x16xf32>
    tpu.vector_store %arg4[%c0_6, %c0_7], %14 {strides = array<i32>} : memref<128x16xf32, #tpu.memory_space<vmem>>, vector<128x16xf32>,
    return
  }
  func.func @transform_0(%arg0: i32) -> (i32, i32) {
    %c0_i32 = arith.constant 0 : i32
    %c0_i32_0 = arith.constant 0 : i32
    return %arg0, %c0_i32 : i32, i32
  }
  func.func @transform_1(%arg0: i32) -> (i32, i32) {
    %c0_i32 = arith.constant 0 : i32
    %c0_i32_0 = arith.constant 0 : i32
    %c0_i32_1 = arith.constant 0 : i32
    return %c0_i32, %c0_i32_0 : i32, i32
  }
  func.func @transform_2(%arg0: i32) -> (i32, i32) {
    %c0_i32 = arith.constant 0 : i32
    %c0_i32_0 = arith.constant 0 : i32
    %c0_i32_1 = arith.constant 0 : i32
    return %c0_i32, %c0_i32_0 : i32, i32
  }
  func.func @transform_3(%arg0: i32) -> (i32, i32) {
    %c0_i32 = arith.constant 0 : i32
    %c0_i32_0 = arith.constant 0 : i32
    return %arg0, %c0_i32 : i32, i32
  }
}

module attributes {stable_mosaic.version = 11 : i64} {
  func.func @_conv_relu_pool_kernel(%arg0: i32, %arg1: memref<256x144xbf16, #tpu.memory_space<vmem>>, %arg2: memref<144x32xbf16, #tpu.memory_space<vmem>>, %arg3: memref<1x32xf32, #tpu.memory_space<vmem>>, %arg4: memref<64x32xf32, #tpu.memory_space<vmem>>) attributes {dimension_semantics = [#tpu.dimension_semantics<parallel>], iteration_bounds = array<i64: 2>, scalar_prefetch = 0 : i64, scratch_operands = 0 : i64, tpu.core_type = #tpu.core_type<tc>, window_params = [{transform_indices = @transform_0, window_bounds = array<i64: 256, 144>}, {pipeline_mode = #tpu.pipeline_mode<synchronous>, transform_indices = @transform_1, window_bounds = array<i64: 144, 32>}, {pipeline_mode = #tpu.pipeline_mode<synchronous>, transform_indices = @transform_2, window_bounds = array<i64: 1, 32>}, {transform_indices = @transform_3, window_bounds = array<i64: 64, 32>}]} {
    %c0 = arith.constant 0 : index
    %c0_0 = arith.constant 0 : index
    %0 = vector.load %arg1[%c0, %c0_0] : memref<256x144xbf16, #tpu.memory_space<vmem>>, vector<256x144xbf16>
    %c0_1 = arith.constant 0 : index
    %c0_2 = arith.constant 0 : index
    %1 = vector.load %arg2[%c0_1, %c0_2] : memref<144x32xbf16, #tpu.memory_space<vmem>>, vector<144x32xbf16>
    %cst = arith.constant dense<0.000000e+00> : vector<256x32xf32>
    %2 = tpu.matmul %0, %1, %cst {dimension_numbers = #tpu.dot_dimension_numbers<[1], [0], [0], [1], [0, 0, 1, 1], [], []>} : vector<256x144xbf16>, vector<144x32xbf16>, vector<256x32xf32> -> vector<256x32xf32>
    %3 = vector.extract_strided_slice %2 {offsets = [0, 0], sizes = [64, 32], strides = [1, 1]} : vector<256x32xf32> to vector<64x32xf32>
    %4 = vector.extract_strided_slice %2 {offsets = [64, 0], sizes = [64, 32], strides = [1, 1]} : vector<256x32xf32> to vector<64x32xf32>
    %5 = arith.maximumf %3, %4 : vector<64x32xf32>
    %6 = vector.extract_strided_slice %2 {offsets = [128, 0], sizes = [64, 32], strides = [1, 1]} : vector<256x32xf32> to vector<64x32xf32>
    %7 = vector.extract_strided_slice %2 {offsets = [192, 0], sizes = [64, 32], strides = [1, 1]} : vector<256x32xf32> to vector<64x32xf32>
    %8 = arith.maximumf %6, %7 : vector<64x32xf32>
    %9 = arith.maximumf %5, %8 : vector<64x32xf32>
    %c0_3 = arith.constant 0 : index
    %c0_4 = arith.constant 0 : index
    %10 = vector.load %arg3[%c0_3, %c0_4] : memref<1x32xf32, #tpu.memory_space<vmem>>, vector<1x32xf32>
    %11 = vector.broadcast %10 : vector<1x32xf32> to vector<64x32xf32>
    %12 = arith.addf %9, %11 : vector<64x32xf32>
    %cst_5 = arith.constant 0.000000e+00 : f32
    %13 = vector.broadcast %cst_5 : f32 to vector<64x32xf32>
    %14 = arith.maximumf %12, %13 : vector<64x32xf32>
    %c0_6 = arith.constant 0 : index
    %c0_7 = arith.constant 0 : index
    %15 = vector.load %arg4[%c0_6, %c0_7] : memref<64x32xf32, #tpu.memory_space<vmem>>, vector<64x32xf32>
    tpu.vector_store %arg4[%c0_6, %c0_7], %14 {strides = array<i32>} : memref<64x32xf32, #tpu.memory_space<vmem>>, vector<64x32xf32>,
    return
  }
  func.func @transform_0(%arg0: i32) -> (i32, i32) {
    %c0_i32 = arith.constant 0 : i32
    %c0_i32_0 = arith.constant 0 : i32
    return %arg0, %c0_i32 : i32, i32
  }
  func.func @transform_1(%arg0: i32) -> (i32, i32) {
    %c0_i32 = arith.constant 0 : i32
    %c0_i32_0 = arith.constant 0 : i32
    %c0_i32_1 = arith.constant 0 : i32
    return %c0_i32, %c0_i32_0 : i32, i32
  }
  func.func @transform_2(%arg0: i32) -> (i32, i32) {
    %c0_i32 = arith.constant 0 : i32
    %c0_i32_0 = arith.constant 0 : i32
    %c0_i32_1 = arith.constant 0 : i32
    return %c0_i32, %c0_i32_0 : i32, i32
  }
  func.func @transform_3(%arg0: i32) -> (i32, i32) {
    %c0_i32 = arith.constant 0 : i32
    %c0_i32_0 = arith.constant 0 : i32
    return %arg0, %c0_i32 : i32, i32
  }
}

module attributes {stable_mosaic.version = 11 : i64} {
  func.func @_lstm_fc_kernel(%arg0: memref<8x512xf32, #tpu.memory_space<vmem>>, %arg1: memref<512x128xf32, #tpu.memory_space<vmem>>, %arg2: memref<1x128xf32, #tpu.memory_space<vmem>>, %arg3: memref<32x128xf32, #tpu.memory_space<vmem>>, %arg4: memref<32x5xf32, #tpu.memory_space<vmem>>, %arg5: memref<1x5xf32, #tpu.memory_space<vmem>>, %arg6: memref<2x5xf32, #tpu.memory_space<vmem>>, %arg7: memref<8x128xf32, #tpu.memory_space<vmem>>) attributes {dimension_semantics = [], scalar_prefetch = 0 : i64, scratch_operands = 1 : i64, tpu.core_type = #tpu.core_type<tc>} {
    %c0 = arith.constant 0 : index
    %c0_0 = arith.constant 0 : index
    %0 = vector.load %arg0[%c0, %c0_0] : memref<8x512xf32, #tpu.memory_space<vmem>>, vector<8x512xf32>
    %c0_1 = arith.constant 0 : index
    %c0_2 = arith.constant 0 : index
    %1 = vector.load %arg1[%c0_1, %c0_2] : memref<512x128xf32, #tpu.memory_space<vmem>>, vector<512x128xf32>
    %cst = arith.constant dense<0.000000e+00> : vector<8x128xf32>
    %2 = tpu.matmul %0, %1, %cst {dimension_numbers = #tpu.dot_dimension_numbers<[1], [0], [0], [1], [0, 0, 1, 1], [], []>} : vector<8x512xf32>, vector<512x128xf32>, vector<8x128xf32> -> vector<8x128xf32>
    %c0_3 = arith.constant 0 : index
    %c0_4 = arith.constant 0 : index
    %3 = vector.load %arg2[%c0_3, %c0_4] : memref<1x128xf32, #tpu.memory_space<vmem>>, vector<1x128xf32>
    %4 = vector.broadcast %3 : vector<1x128xf32> to vector<8x128xf32>
    %5 = arith.addf %2, %4 : vector<8x128xf32>
    %c0_5 = arith.constant 0 : index
    %c0_6 = arith.constant 0 : index
    %6 = vector.load %arg7[%c0_5, %c0_6] : memref<8x128xf32, #tpu.memory_space<vmem>>, vector<8x128xf32>
    tpu.vector_store %arg7[%c0_5, %c0_6], %5 {strides = array<i32>} : memref<8x128xf32, #tpu.memory_space<vmem>>, vector<8x128xf32>,
    %c0_7 = arith.constant 0 : index
    %c0_8 = arith.constant 0 : index
    %7 = vector.load %arg3[%c0_7, %c0_8] : memref<32x128xf32, #tpu.memory_space<vmem>>, vector<32x128xf32>
    %cst_9 = arith.constant 0.000000e+00 : f32
    %8 = vector.broadcast %cst_9 : f32 to vector<2x32xf32>
    %cst_10 = arith.constant 0.000000e+00 : f32
    %9 = vector.broadcast %cst_10 : f32 to vector<2x32xf32>
    %c0_11 = arith.constant 0 : index
    %c0_12 = arith.constant 0 : index
    %10 = vector.load %arg7[%c0_11, %c0_12] : memref<8x128xf32, #tpu.memory_space<vmem>>, vector<2x128xf32>
    %cst_13 = arith.constant dense<0.000000e+00> : vector<2x128xf32>
    %11 = tpu.matmul %8, %7, %cst_13 {dimension_numbers = #tpu.dot_dimension_numbers<[1], [0], [0], [1], [0, 0, 1, 1], [], []>} : vector<2x32xf32>, vector<32x128xf32>, vector<2x128xf32> -> vector<2x128xf32>
    %12 = arith.addf %10, %11 : vector<2x128xf32>
    %13 = vector.extract_strided_slice %12 {offsets = [0, 0], sizes = [2, 32], strides = [1, 1]} : vector<2x128xf32> to vector<2x32xf32>
    %14 = arith.negf %13 : vector<2x32xf32>
    %15 = math.exp %14 : vector<2x32xf32>
    %cst_14 = arith.constant 1.000000e+00 : f32
    %16 = vector.broadcast %cst_14 : f32 to vector<2x32xf32>
    %17 = arith.addf %16, %15 : vector<2x32xf32>
    %18 = arith.divf %16, %17 : vector<2x32xf32>
    %19 = vector.extract_strided_slice %12 {offsets = [0, 32], sizes = [2, 32], strides = [1, 1]} : vector<2x128xf32> to vector<2x32xf32>
    %20 = arith.negf %19 : vector<2x32xf32>
    %21 = math.exp %20 : vector<2x32xf32>
    %cst_15 = arith.constant 1.000000e+00 : f32
    %22 = vector.broadcast %cst_15 : f32 to vector<2x32xf32>
    %23 = arith.addf %22, %21 : vector<2x32xf32>
    %24 = arith.divf %22, %23 : vector<2x32xf32>
    %25 = vector.extract_strided_slice %12 {offsets = [0, 64], sizes = [2, 32], strides = [1, 1]} : vector<2x128xf32> to vector<2x32xf32>
    %26 = math.tanh %25 : vector<2x32xf32>
    %27 = vector.extract_strided_slice %12 {offsets = [0, 96], sizes = [2, 32], strides = [1, 1]} : vector<2x128xf32> to vector<2x32xf32>
    %28 = arith.negf %27 : vector<2x32xf32>
    %29 = math.exp %28 : vector<2x32xf32>
    %cst_16 = arith.constant 1.000000e+00 : f32
    %30 = vector.broadcast %cst_16 : f32 to vector<2x32xf32>
    %31 = arith.addf %30, %29 : vector<2x32xf32>
    %32 = arith.divf %30, %31 : vector<2x32xf32>
    %33 = arith.mulf %24, %9 : vector<2x32xf32>
    %34 = arith.mulf %18, %26 : vector<2x32xf32>
    %35 = arith.addf %33, %34 : vector<2x32xf32>
    %36 = math.tanh %35 : vector<2x32xf32>
    %37 = arith.mulf %32, %36 : vector<2x32xf32>
    %c2 = arith.constant 2 : index
    %c0_17 = arith.constant 0 : index
    %38 = vector.load %arg7[%c2, %c0_17] : memref<8x128xf32, #tpu.memory_space<vmem>>, vector<2x128xf32>
    %cst_18 = arith.constant dense<0.000000e+00> : vector<2x128xf32>
    %39 = tpu.matmul %37, %7, %cst_18 {dimension_numbers = #tpu.dot_dimension_numbers<[1], [0], [0], [1], [0, 0, 1, 1], [], []>} : vector<2x32xf32>, vector<32x128xf32>, vector<2x128xf32> -> vector<2x128xf32>
    %40 = arith.addf %38, %39 : vector<2x128xf32>
    %41 = vector.extract_strided_slice %40 {offsets = [0, 0], sizes = [2, 32], strides = [1, 1]} : vector<2x128xf32> to vector<2x32xf32>
    %42 = arith.negf %41 : vector<2x32xf32>
    %43 = math.exp %42 : vector<2x32xf32>
    %cst_19 = arith.constant 1.000000e+00 : f32
    %44 = vector.broadcast %cst_19 : f32 to vector<2x32xf32>
    %45 = arith.addf %44, %43 : vector<2x32xf32>
    %46 = arith.divf %44, %45 : vector<2x32xf32>
    %47 = vector.extract_strided_slice %40 {offsets = [0, 32], sizes = [2, 32], strides = [1, 1]} : vector<2x128xf32> to vector<2x32xf32>
    %48 = arith.negf %47 : vector<2x32xf32>
    %49 = math.exp %48 : vector<2x32xf32>
    %cst_20 = arith.constant 1.000000e+00 : f32
    %50 = vector.broadcast %cst_20 : f32 to vector<2x32xf32>
    %51 = arith.addf %50, %49 : vector<2x32xf32>
    %52 = arith.divf %50, %51 : vector<2x32xf32>
    %53 = vector.extract_strided_slice %40 {offsets = [0, 64], sizes = [2, 32], strides = [1, 1]} : vector<2x128xf32> to vector<2x32xf32>
    %54 = math.tanh %53 : vector<2x32xf32>
    %55 = vector.extract_strided_slice %40 {offsets = [0, 96], sizes = [2, 32], strides = [1, 1]} : vector<2x128xf32> to vector<2x32xf32>
    %56 = arith.negf %55 : vector<2x32xf32>
    %57 = math.exp %56 : vector<2x32xf32>
    %cst_21 = arith.constant 1.000000e+00 : f32
    %58 = vector.broadcast %cst_21 : f32 to vector<2x32xf32>
    %59 = arith.addf %58, %57 : vector<2x32xf32>
    %60 = arith.divf %58, %59 : vector<2x32xf32>
    %61 = arith.mulf %52, %35 : vector<2x32xf32>
    %62 = arith.mulf %46, %54 : vector<2x32xf32>
    %63 = arith.addf %61, %62 : vector<2x32xf32>
    %64 = math.tanh %63 : vector<2x32xf32>
    %65 = arith.mulf %60, %64 : vector<2x32xf32>
    %c4 = arith.constant 4 : index
    %c0_22 = arith.constant 0 : index
    %66 = vector.load %arg7[%c4, %c0_22] : memref<8x128xf32, #tpu.memory_space<vmem>>, vector<2x128xf32>
    %cst_23 = arith.constant dense<0.000000e+00> : vector<2x128xf32>
    %67 = tpu.matmul %65, %7, %cst_23 {dimension_numbers = #tpu.dot_dimension_numbers<[1], [0], [0], [1], [0, 0, 1, 1], [], []>} : vector<2x32xf32>, vector<32x128xf32>, vector<2x128xf32> -> vector<2x128xf32>
    %68 = arith.addf %66, %67 : vector<2x128xf32>
    %69 = vector.extract_strided_slice %68 {offsets = [0, 0], sizes = [2, 32], strides = [1, 1]} : vector<2x128xf32> to vector<2x32xf32>
    %70 = arith.negf %69 : vector<2x32xf32>
    %71 = math.exp %70 : vector<2x32xf32>
    %cst_24 = arith.constant 1.000000e+00 : f32
    %72 = vector.broadcast %cst_24 : f32 to vector<2x32xf32>
    %73 = arith.addf %72, %71 : vector<2x32xf32>
    %74 = arith.divf %72, %73 : vector<2x32xf32>
    %75 = vector.extract_strided_slice %68 {offsets = [0, 32], sizes = [2, 32], strides = [1, 1]} : vector<2x128xf32> to vector<2x32xf32>
    %76 = arith.negf %75 : vector<2x32xf32>
    %77 = math.exp %76 : vector<2x32xf32>
    %cst_25 = arith.constant 1.000000e+00 : f32
    %78 = vector.broadcast %cst_25 : f32 to vector<2x32xf32>
    %79 = arith.addf %78, %77 : vector<2x32xf32>
    %80 = arith.divf %78, %79 : vector<2x32xf32>
    %81 = vector.extract_strided_slice %68 {offsets = [0, 64], sizes = [2, 32], strides = [1, 1]} : vector<2x128xf32> to vector<2x32xf32>
    %82 = math.tanh %81 : vector<2x32xf32>
    %83 = vector.extract_strided_slice %68 {offsets = [0, 96], sizes = [2, 32], strides = [1, 1]} : vector<2x128xf32> to vector<2x32xf32>
    %84 = arith.negf %83 : vector<2x32xf32>
    %85 = math.exp %84 : vector<2x32xf32>
    %cst_26 = arith.constant 1.000000e+00 : f32
    %86 = vector.broadcast %cst_26 : f32 to vector<2x32xf32>
    %87 = arith.addf %86, %85 : vector<2x32xf32>
    %88 = arith.divf %86, %87 : vector<2x32xf32>
    %89 = arith.mulf %80, %63 : vector<2x32xf32>
    %90 = arith.mulf %74, %82 : vector<2x32xf32>
    %91 = arith.addf %89, %90 : vector<2x32xf32>
    %92 = math.tanh %91 : vector<2x32xf32>
    %93 = arith.mulf %88, %92 : vector<2x32xf32>
    %c6 = arith.constant 6 : index
    %c0_27 = arith.constant 0 : index
    %94 = vector.load %arg7[%c6, %c0_27] : memref<8x128xf32, #tpu.memory_space<vmem>>, vector<2x128xf32>
    %cst_28 = arith.constant dense<0.000000e+00> : vector<2x128xf32>
    %95 = tpu.matmul %93, %7, %cst_28 {dimension_numbers = #tpu.dot_dimension_numbers<[1], [0], [0], [1], [0, 0, 1, 1], [], []>} : vector<2x32xf32>, vector<32x128xf32>, vector<2x128xf32> -> vector<2x128xf32>
    %96 = arith.addf %94, %95 : vector<2x128xf32>
    %97 = vector.extract_strided_slice %96 {offsets = [0, 0], sizes = [2, 32], strides = [1, 1]} : vector<2x128xf32> to vector<2x32xf32>
    %98 = arith.negf %97 : vector<2x32xf32>
    %99 = math.exp %98 : vector<2x32xf32>
    %cst_29 = arith.constant 1.000000e+00 : f32
    %100 = vector.broadcast %cst_29 : f32 to vector<2x32xf32>
    %101 = arith.addf %100, %99 : vector<2x32xf32>
    %102 = arith.divf %100, %101 : vector<2x32xf32>
    %103 = vector.extract_strided_slice %96 {offsets = [0, 32], sizes = [2, 32], strides = [1, 1]} : vector<2x128xf32> to vector<2x32xf32>
    %104 = arith.negf %103 : vector<2x32xf32>
    %105 = math.exp %104 : vector<2x32xf32>
    %cst_30 = arith.constant 1.000000e+00 : f32
    %106 = vector.broadcast %cst_30 : f32 to vector<2x32xf32>
    %107 = arith.addf %106, %105 : vector<2x32xf32>
    %108 = arith.divf %106, %107 : vector<2x32xf32>
    %109 = vector.extract_strided_slice %96 {offsets = [0, 64], sizes = [2, 32], strides = [1, 1]} : vector<2x128xf32> to vector<2x32xf32>
    %110 = math.tanh %109 : vector<2x32xf32>
    %111 = vector.extract_strided_slice %96 {offsets = [0, 96], sizes = [2, 32], strides = [1, 1]} : vector<2x128xf32> to vector<2x32xf32>
    %112 = arith.negf %111 : vector<2x32xf32>
    %113 = math.exp %112 : vector<2x32xf32>
    %cst_31 = arith.constant 1.000000e+00 : f32
    %114 = vector.broadcast %cst_31 : f32 to vector<2x32xf32>
    %115 = arith.addf %114, %113 : vector<2x32xf32>
    %116 = arith.divf %114, %115 : vector<2x32xf32>
    %117 = arith.mulf %108, %91 : vector<2x32xf32>
    %118 = arith.mulf %102, %110 : vector<2x32xf32>
    %119 = arith.addf %117, %118 : vector<2x32xf32>
    %120 = math.tanh %119 : vector<2x32xf32>
    %121 = arith.mulf %116, %120 : vector<2x32xf32>
    %c0_32 = arith.constant 0 : index
    %c0_33 = arith.constant 0 : index
    %122 = vector.load %arg4[%c0_32, %c0_33] : memref<32x5xf32, #tpu.memory_space<vmem>>, vector<32x5xf32>
    %cst_34 = arith.constant dense<0.000000e+00> : vector<2x5xf32>
    %123 = tpu.matmul %121, %122, %cst_34 {dimension_numbers = #tpu.dot_dimension_numbers<[1], [0], [0], [1], [0, 0, 1, 1], [], []>} : vector<2x32xf32>, vector<32x5xf32>, vector<2x5xf32> -> vector<2x5xf32>
    %c0_35 = arith.constant 0 : index
    %c0_36 = arith.constant 0 : index
    %124 = vector.load %arg5[%c0_35, %c0_36] : memref<1x5xf32, #tpu.memory_space<vmem>>, vector<1x5xf32>
    %125 = vector.broadcast %124 : vector<1x5xf32> to vector<2x5xf32>
    %126 = arith.addf %123, %125 : vector<2x5xf32>
    %c0_37 = arith.constant 0 : index
    %c0_38 = arith.constant 0 : index
    %127 = vector.load %arg6[%c0_37, %c0_38] : memref<2x5xf32, #tpu.memory_space<vmem>>, vector<2x5xf32>
    tpu.vector_store %arg6[%c0_37, %c0_38], %126 {strides = array<i32>} : memref<2x5xf32, #tpu.memory_space<vmem>>, vector<2x5xf32>,
    return
  }
}

</mosaic_0001>

<bundles_post_ra>
// kernel: cnn_lstm_forward.3
= control target key start
LH: loop header
LB: loop body
LE: loop exit
PB: predicated region body
PF: predicated region fallthrough
CT: control target
= control target key end

     0   :  { %s1215_s12 = smov 0   ;;  %s1435_s0 = inlined_call_operand.vmem [shape: bf16[2048,32], index: 0, kind: input, shape index: {}]   ;;  %s1436_s1 = inlined_call_operand.vmem [shape: bf16[32,16], index: 1, kind: input, shape index: {}]   ;;  %s1437_s2 = inlined_call_operand.vmem [shape: f32[1,16], index: 2, kind: input, shape index: {}]   ;;  %s1438_s3 = inlined_call_operand.vmem [shape: f32[512,16], index: 3, kind: output, shape index: {}]  }
   0x1 LB: > { %s961_s13 = sadd.s32 4294967295, %s1193_s12   ;;  %p965_p0 = scmp.ge.s32.totalorder %s1193_s12, 1  ;;  %s1193_s12 = sphi %s1215_s12, %s13_s12  }
   0x2   : > { %p138_p1 = scmp.lt.s32.totalorder %s1193_s12, 5 }
   0x4   : > { %p139_p2 = pnand %p965_p0, %p138_p1 }
   0x5   : > { %s966_s16 = sshll.u32 (!%p139_p2), %s961_s13, 6  ;;  %s968_s23 = sshll.u32 (!%p139_p2), %s961_s13, 4 }
   0x6   : > { %142 = sbr.rel (%p139_p2) target bundleno = 285 (0x11d), region = 32  ;;  %p163_p3 = scmp.lt.s32.totalorder (!%p139_p2), %s966_s16, 255 }
   0x7   : > { %p169_p4 = scmp.lt.s32.totalorder (!%p139_p2), %s968_s23, 63 }
   0xb   : > { %v1153_v0 = vld [vmem:[%s1436_s1 + $0x8] sm:$0xff]   ;;  %v1154_v1 = vld [vmem:[%s1436_s1] sm:$0xff]   ;;  %s1440_s16 = smov (!%p163_p3, %s966_s16), 255  ;;  %vm415_vm0 = vcmask 261120   ;;  %s1442_s23 = smov (!%p169_p4, %s968_s23), 63  ;;  %vm888_vm1 = vcmask 130048  }
   0xc   : > { %1073 = vmatprep.subr.bf16.mxu0 %v1153_v0  ;;  %1141 = vmatprep.subr.bf16.mxu1 %v1153_v0  ;;  %s967_s19 = sshll.u32 %s1440_s16, 2  ;;  %s969_s26 = sshll.u32 %s1442_s23, 3 }
   0xd   : > { %1074 = vmatpush3.bf16.msra.mxu0 %v1153_v0  ;;  %1143 = vmatpush3.bf16.msra.mxu1 %v1153_v0  ;;  %s1234_s22 = scalar_lea.vmem %s1435_s0, %s967_s19  ;;  %s1359_s29 = scalar_lea.vmem %s1438_s3, %s969_s26 }
   0xe   : > { %1075 = vmatprep.subr.bf16.mxu0 %v1154_v1  ;;  %1142 = vmatprep.subr.bf16.mxu1 %v1154_v1  ;;  %v1155_v2 = vld [vmem:[%s1234_s22] sm:$0xff]   ;;  %v1157_v4 = vld [vmem:[%s1234_s22 + $0x8] sm:$0xff]   ;;  %v1159_v6 = vld [vmem:[%s1234_s22 + $0x10] sm:$0xff]  }
   0xf   : > { %v1156_v3 = vld [vmem:[%s1234_s22 + $0x80] sm:$0xff]   ;;  %1077 = vmatprep.mubr.msk.bf16.mxu0 %vm415_vm0, %v1155_v2  ;;  %v1158_v5 = vld [vmem:[%s1234_s22 + $0x88] sm:$0xff]   ;;  %v1160_v7 = vld [vmem:[%s1234_s22 + $0x90] sm:$0xff]  }
  0x10   : > { %1109 = vmatprep.mubr.msk.bf16.mxu1 %vm415_vm0, %v1156_v3  ;;  %v1161_v8 = vld [vmem:[%s1234_s22 + $0x18] sm:$0xff]   ;;  %v1163_v10 = vld [vmem:[%s1234_s22 + $0x20] sm:$0xff]   ;;  %v1165_v12 = vld [vmem:[%s1234_s22 + $0x28] sm:$0xff]  }
  0x11   : > { %1076 = vmatpush3.bf16.msra.mxu0 %v1154_v1  ;;  %1144 = vmatpush3.bf16.msra.mxu1 %v1154_v1  ;;  %v1162_v9 = vld [vmem:[%s1234_s22 + $0x98] sm:$0xff]   ;;  %v1164_v11 = vld [vmem:[%s1234_s22 + $0xa0] sm:$0xff]   ;;  %v1166_v13 = vld [vmem:[%s1234_s22 + $0xa8] sm:$0xff]  }
  0x12   : > { %v1167_v14 = vld [vmem:[%s1234_s22 + $0x30] sm:$0xff]   ;;  %v1169_v16 = vld [vmem:[%s1234_s22 + $0x38] sm:$0xff]   ;;  %v1171_v18 = vld [vmem:[%s1234_s22 + $0x40] sm:$0xff]  }
  0x13   : > { %v1168_v15 = vld [vmem:[%s1234_s22 + $0xb0] sm:$0xff]   ;;  %v1170_v17 = vld [vmem:[%s1234_s22 + $0xb8] sm:$0xff]   ;;  %v1172_v19 = vld [vmem:[%s1234_s22 + $0xc0] sm:$0xff]  }
  0x14   : > { %1078 = vmatmul.mubr.msk.bf16.vlgmr.msra.gmra.mxu0 %vm415_vm0, %v1157_v4  ;;  %1110 = vmatmul.mubr.msk.bf16.vlgmr.msra.gmra.mxu1 %vm415_vm0, %v1158_v5  ;;  %v1173_v20 = vld [vmem:[%s1234_s22 + $0x48] sm:$0xff]   ;;  %v1175_v22 = vld [vmem:[%s1234_s22 + $0x50] sm:$0xff]   ;;  %v1177_v24 = vld [vmem:[%s1234_s22 + $0x58] sm:$0xff]  }
  0x15   : > { %1081 = vmatprep.mubr.msk.bf16.mxu0 %vm415_vm0, %v1159_v6  ;;  %1113 = vmatprep.mubr.msk.bf16.mxu1 %vm415_vm0, %v1160_v7  ;;  %v1174_v21 = vld [vmem:[%s1234_s22 + $0xc8] sm:$0xff]   ;;  %v1176_v23 = vld [vmem:[%s1234_s22 + $0xd0] sm:$0xff]   ;;  %v1178_v25 = vld [vmem:[%s1234_s22 + $0xd8] sm:$0xff]  }
  0x16   : > { %v1179_v26 = vld [vmem:[%s1234_s22 + $0x60] sm:$0xff]   ;;  %v1181_v28 = vld [vmem:[%s1234_s22 + $0x68] sm:$0xff]   ;;  %v1183_v30 = vld [vmem:[%s1234_s22 + $0x70] sm:$0xff]  }
  0x17   : > { %v1180_v27 = vld [vmem:[%s1234_s22 + $0xe0] sm:$0xff]   ;;  %v1182_v29 = vld [vmem:[%s1234_s22 + $0xe8] sm:$0xff]   ;;  %v1184_v31 = vld [vmem:[%s1234_s22 + $0xf0] sm:$0xff]  }
  0x18   : > { %v1185_v32 = vld [vmem:[%s1234_s22 + $0x78] sm:$0xff]   ;;  %v1353_v7 = vld [vmem:[%s1437_s2] ss:$0 sm:$0xff] }
  0x19   : > { %v1186_v33 = vld [vmem:[%s1234_s22 + $0xf8] sm:$0xff]  }
  0x1c   : > { %1082 = vmatmul.mubr.msk.bf16.gmra.mxu0 %vm415_vm0, %v1161_v8  ;;  %1114 = vmatmul.mubr.msk.bf16.gmra.mxu1 %vm415_vm0, %v1162_v9 }
  0x1d   : > { %1085 = vmatprep.mubr.msk.bf16.mxu0 %vm415_vm0, %v1163_v10  ;;  %1117 = vmatprep.mubr.msk.bf16.mxu1 %vm415_vm0, %v1164_v11 }
  0x24   : > { %1086 = vmatmul.mubr.msk.bf16.gmra.mxu0 %vm415_vm0, %v1165_v12  ;;  %1118 = vmatmul.mubr.msk.bf16.gmra.mxu1 %vm415_vm0, %v1166_v13 }
  0x25   : > { %1089 = vmatprep.mubr.msk.bf16.mxu0 %vm415_vm0, %v1167_v14  ;;  %1121 = vmatprep.mubr.msk.bf16.mxu1 %vm415_vm0, %v1168_v15 }
  0x2c   : > { %1090 = vmatmul.mubr.msk.bf16.gmra.mxu0 %vm415_vm0, %v1169_v16  ;;  %1122 = vmatmul.mubr.msk.bf16.gmra.mxu1 %vm415_vm0, %v1170_v17 }
  0x2d   : > { %1093 = vmatprep.mubr.msk.bf16.mxu0 %vm415_vm0, %v1171_v18  ;;  %1125 = vmatprep.mubr.msk.bf16.mxu1 %vm415_vm0, %v1172_v19 }
  0x34   : > { %1094 = vmatmul.mubr.msk.bf16.gmra.mxu0 %vm415_vm0, %v1173_v20  ;;  %1126 = vmatmul.mubr.msk.bf16.gmra.mxu1 %vm415_vm0, %v1174_v21 }
  0x35   : > { %1097 = vmatprep.mubr.msk.bf16.mxu0 %vm415_vm0, %v1175_v22  ;;  %1129 = vmatprep.mubr.msk.bf16.mxu1 %vm415_vm0, %v1176_v23 }
  0x3c   : > { %1098 = vmatmul.mubr.msk.bf16.gmra.mxu0 %vm415_vm0, %v1177_v24  ;;  %1130 = vmatmul.mubr.msk.bf16.gmra.mxu1 %vm415_vm0, %v1178_v25 }
  0x3d   : > { %1101 = vmatprep.mubr.msk.bf16.mxu0 %vm415_vm0, %v1179_v26  ;;  %1133 = vmatprep.mubr.msk.bf16.mxu1 %vm415_vm0, %v1180_v27 }
  0x44   : > { %1102 = vmatmul.mubr.msk.bf16.gmra.mxu0 %vm415_vm0, %v1181_v28  ;;  %1134 = vmatmul.mubr.msk.bf16.gmra.mxu1 %vm415_vm0, %v1182_v29 }
  0x45   : > { %1105 = vmatprep.mubr.msk.bf16.mxu0 %vm415_vm0, %v1183_v30  ;;  %1137 = vmatprep.mubr.msk.bf16.mxu1 %vm415_vm0, %v1184_v31 }
  0x4c   : > { %1106 = vmatmul.mubr.msk.bf16.gmra.mxu0 %vm415_vm0, %v1185_v32  ;;  %1138 = vmatmul.mubr.msk.bf16.gmra.mxu1 %vm415_vm0, %v1186_v33 }
  0xd4   : > { %v1079_v34 = vpop.f32.mrf.mxu0  ;;  %v1111_v35 = vpop.f32.mrf.mxu1 }
  0xd6   : > { %v546_v36 = vpop.f32.mrf.mxu0  ;;  %v674_v37 = vpop.f32.mrf.mxu1 }
  0xd8   : > { %v1080_v38 = vpop.f32.mrf.mxu0  ;;  %v1112_v39 = vpop.f32.mrf.mxu1 }
  0xda   : > { %v549_v40 = vpop.f32.mrf.mxu0  ;;  %v677_v41 = vpop.f32.mrf.mxu1 }
  0xdc   : > { %v1300_v42 = vpop.f32.mrf.mxu0  ;;  %v1302_v43 = vpop.f32.mrf.mxu1 }
  0xde   : > { %v1304_v44 = vpop.f32.mrf.mxu0  ;;  %v1306_v45 = vpop.f32.mrf.mxu1 }
  0xe0   : > { %v1308_v46 = vpop.f32.mrf.mxu0  ;;  %v1310_v47 = vpop.f32.mrf.mxu1 }
  0xe2   : > { %v1312_v48 = vpop.f32.mrf.mxu0  ;;  %v1314_v49 = vpop.f32.mrf.mxu1 }
  0xe4   : > { %v1316_v50 = vpop.f32.mrf.mxu0  ;;  %v1318_v51 = vpop.f32.mrf.mxu1 }
  0xe6   : > { %v1320_v52 = vpop.f32.mrf.mxu0  ;;  %v1322_v53 = vpop.f32.mrf.mxu1 }
  0xe8   : > { %v1324_v54 = vpop.f32.mrf.mxu0  ;;  %v1326_v55 = vpop.f32.mrf.mxu1 }
  0xea   : > { %v1328_v56 = vpop.f32.mrf.mxu0  ;;  %v1330_v57 = vpop.f32.mrf.mxu1 }
  0xec   : > { %v1332_v58 = vpop.f32.mrf.mxu0  ;;  %v1334_v59 = vpop.f32.mrf.mxu1 }
  0xee   : > { %v1338_v60 = vpop.f32.mrf.mxu0  ;;  %v1340_v61 = vpop.f32.mrf.mxu1 }
  0xf0   : > { %v1342_v62 = vpop.f32.mrf.mxu0  ;;  %v1344_v63 = vpop.f32.mrf.mxu1 }
  0xf2   : > { %v1346_v0 = vpop.f32.mrf.mxu0  ;;  %v1348_v1 = vpop.f32.mrf.mxu1 }
  0xf4   : > { %v1095_v2 = vpop.f32.mrf.mxu0  ;;  %v1127_v4 = vpop.f32.mrf.mxu1 }
  0xf5   : > { %v803_v3 = vmax.f32 %v1079_v34, %v1095_v2  ;;  %v819_v5 = vmax.f32 %v1111_v35, %v1127_v4 }
  0xf6   : > { %v610_v6 = vpop.f32.mrf.mxu0  ;;  %v738_v9 = vpop.f32.mrf.mxu1 }
  0xf7   : > { %v801_v8 = vmax.f32 %v546_v36, %v610_v6  ;;  %v835_v10 = vmax.f32 %v803_v3, %v819_v5  ;;  %v817_v11 = vmax.f32 %v674_v37, %v738_v9 }
  0xf8   : > { %v1096_v12 = vpop.f32.mrf.mxu0  ;;  %v1128_v14 = vpop.f32.mrf.mxu1 }
  0xf9   : > { %v804_v13 = vmax.f32 %v1080_v38, %v1096_v12  ;;  %v858_v15 = vadd.f32 %v1353_v7, %v835_v10  ;;  %v833_v16 = vmax.f32 %v801_v8, %v817_v11  ;;  %v820_v17 = vmax.f32 %v1112_v39, %v1128_v14 }
  0xfa   : > { %v613_v18 = vpop.f32.mrf.mxu0  ;;  %v741_v20 = vpop.f32.mrf.mxu1 }
  0xfb   : > { %v802_v19 = vmax.f32 %v549_v40, %v613_v18  ;;  %v874_v21 = vmax.f32 %v858_v15, 0.0  ;;  %v856_v22 = vadd.f32 %v1353_v7, %v833_v16  ;;  %v836_v23 = vmax.f32 %v804_v13, %v820_v17 }
  0xfc   : > { %v818_v24 = vmax.f32 %v677_v41, %v741_v20  ;;  %v1099_v25 = vpop.f32.mrf.mxu0  ;;  %v1131_v27 = vpop.f32.mrf.mxu1 }
  0xfd   : > { %v807_v26 = vmax.f32 %v1300_v42, %v1099_v25  ;;  %891 = vst.msk [vmem:[%s1359_s29 + $0x10] sm:$0xff] %vm888_vm1, %v874_v21  ;;  %v872_v28 = vmax.f32 %v856_v22, 0.0  ;;  %v859_v29 = vadd.f32 %v1353_v7, %v836_v23  ;;  %v823_v31 = vmax.f32 %v1302_v43, %v1131_v27 }
  0xfe   : > { %v834_v30 = vmax.f32 %v802_v19, %v818_v24  ;;  %v626_v32 = vpop.f32.mrf.mxu0  ;;  %v754_v34 = vpop.f32.mrf.mxu1 }
  0xff   : > { %v805_v33 = vmax.f32 %v1304_v44, %v626_v32  ;;  %889 = vst.msk [vmem:[%s1359_s29] sm:$0xff] %vm888_vm1, %v872_v28  ;;  %v875_v35 = vmax.f32 %v859_v29, 0.0  ;;  %v839_v37 = vmax.f32 %v807_v26, %v823_v31  ;;  %v821_v38 = vmax.f32 %v1306_v45, %v754_v34 }
 0x100   : > { %v857_v36 = vadd.f32 %v1353_v7, %v834_v30  ;;  %v1100_v39 = vpop.f32.mrf.mxu0  ;;  %v1132_v41 = vpop.f32.mrf.mxu1 }
 0x101   : > { %v808_v40 = vmax.f32 %v1308_v46, %v1100_v39  ;;  %892 = vst.msk [vmem:[%s1359_s29 + $0x18] sm:$0xff] %vm888_vm1, %v875_v35  ;;  %v862_v43 = vadd.f32 %v1353_v7, %v839_v37  ;;  %v837_v44 = vmax.f32 %v805_v33, %v821_v38  ;;  %v824_v2 = vmax.f32 %v1310_v47, %v1132_v41 }
 0x102   : > { %v873_v42 = vmax.f32 %v857_v36, 0.0  ;;  %v629_v3 = vpop.f32.mrf.mxu0  ;;  %v757_v5 = vpop.f32.mrf.mxu1 }
 0x103   : > { %v806_v4 = vmax.f32 %v1312_v48, %v629_v3  ;;  %v878_v45 = vmax.f32 %v862_v43, 0.0  ;;  %v860_v46 = vadd.f32 %v1353_v7, %v837_v44  ;;  %v840_v6 = vmax.f32 %v808_v40, %v824_v2 }
 0x104   : > { %890 = vst.msk [vmem:[%s1359_s29 + $0x8] sm:$0xff] %vm888_vm1, %v873_v42  ;;  %v822_v8 = vmax.f32 %v1314_v49, %v757_v5  ;;  %v1103_v9 = vpop.f32.mrf.mxu0  ;;  %v1135_v11 = vpop.f32.mrf.mxu1 }
 0x105   : > { %v811_v10 = vmax.f32 %v1316_v50, %v1103_v9  ;;  %895 = vst.msk [vmem:[%s1359_s29 + $0x30] sm:$0xff] %vm888_vm1, %v878_v45  ;;  %v876_v47 = vmax.f32 %v860_v46, 0.0  ;;  %v863_v48 = vadd.f32 %v1353_v7, %v840_v6  ;;  %v827_v13 = vmax.f32 %v1318_v51, %v1135_v11 }
 0x106   : > { %v838_v12 = vmax.f32 %v806_v4, %v822_v8  ;;  %v642_v14 = vpop.f32.mrf.mxu0  ;;  %v770_v16 = vpop.f32.mrf.mxu1 }
 0x107   : > { %v809_v15 = vmax.f32 %v1320_v52, %v642_v14  ;;  %893 = vst.msk [vmem:[%s1359_s29 + $0x20] sm:$0xff] %vm888_vm1, %v876_v47  ;;  %v879_v49 = vmax.f32 %v863_v48, 0.0  ;;  %v843_v17 = vmax.f32 %v811_v10, %v827_v13  ;;  %v825_v18 = vmax.f32 %v1322_v53, %v770_v16 }
 0x108   : > { %v861_v50 = vadd.f32 %v1353_v7, %v838_v12  ;;  %v1104_v19 = vpop.f32.mrf.mxu0  ;;  %v1136_v21 = vpop.f32.mrf.mxu1 }
 0x109   : > { %v812_v20 = vmax.f32 %v1324_v54, %v1104_v19  ;;  %896 = vst.msk [vmem:[%s1359_s29 + $0x38] sm:$0xff] %vm888_vm1, %v879_v49  ;;  %v866_v52 = vadd.f32 %v1353_v7, %v843_v17  ;;  %v841_v22 = vmax.f32 %v809_v15, %v825_v18  ;;  %v828_v23 = vmax.f32 %v1326_v55, %v1136_v21 }
 0x10a   : > { %v877_v51 = vmax.f32 %v861_v50, 0.0  ;;  %v645_v24 = vpop.f32.mrf.mxu0  ;;  %v773_v26 = vpop.f32.mrf.mxu1 }
 0x10b   : > { %v810_v25 = vmax.f32 %v1328_v56, %v645_v24  ;;  %v882_v53 = vmax.f32 %v866_v52, 0.0  ;;  %v864_v54 = vadd.f32 %v1353_v7, %v841_v22  ;;  %v844_v27 = vmax.f32 %v812_v20, %v828_v23 }
 0x10c   : > { %894 = vst.msk [vmem:[%s1359_s29 + $0x28] sm:$0xff] %vm888_vm1, %v877_v51  ;;  %v826_v28 = vmax.f32 %v1330_v57, %v773_v26  ;;  %v1107_v29 = vpop.f32.mrf.mxu0  ;;  %v1139_v31 = vpop.f32.mrf.mxu1 }
 0x10d   : > { %v815_v30 = vmax.f32 %v1332_v58, %v1107_v29  ;;  %899 = vst.msk [vmem:[%s1359_s29 + $0x50] sm:$0xff] %vm888_vm1, %v882_v53  ;;  %v880_v55 = vmax.f32 %v864_v54, 0.0  ;;  %v867_v56 = vadd.f32 %v1353_v7, %v844_v27  ;;  %v831_v33 = vmax.f32 %v1334_v59, %v1139_v31 }
 0x10e   : > { %v842_v32 = vmax.f32 %v810_v25, %v826_v28  ;;  %v658_v34 = vpop.f32.mrf.mxu0  ;;  %v786_v36 = vpop.f32.mrf.mxu1 }
 0x10f   : > { %v813_v35 = vmax.f32 %v1338_v60, %v658_v34  ;;  %897 = vst.msk [vmem:[%s1359_s29 + $0x40] sm:$0xff] %vm888_vm1, %v880_v55  ;;  %v883_v57 = vmax.f32 %v867_v56, 0.0  ;;  %v847_v37 = vmax.f32 %v815_v30, %v831_v33  ;;  %v829_v38 = vmax.f32 %v1340_v61, %v786_v36 }
 0x110   : > { %v865_v58 = vadd.f32 %v1353_v7, %v842_v32  ;;  %v1108_v39 = vpop.f32.mrf.mxu0  ;;  %v1140_v41 = vpop.f32.mrf.mxu1 }
 0x111   : > { %v816_v40 = vmax.f32 %v1342_v62, %v1108_v39  ;;  %900 = vst.msk [vmem:[%s1359_s29 + $0x58] sm:$0xff] %vm888_vm1, %v883_v57  ;;  %v870_v60 = vadd.f32 %v1353_v7, %v847_v37  ;;  %v845_v42 = vmax.f32 %v813_v35, %v829_v38  ;;  %v832_v43 = vmax.f32 %v1344_v63, %v1140_v41 }
 0x112   : > { %v881_v59 = vmax.f32 %v865_v58, 0.0  ;;  %v661_v44 = vpop.f32.mrf.mxu0  ;;  %v789_v61 = vpop.f32.mrf.mxu1 }
 0x113   : > { %v814_v2 = vmax.f32 %v1346_v0, %v661_v44  ;;  %v886_v3 = vmax.f32 %v870_v60, 0.0  ;;  %v868_v62 = vadd.f32 %v1353_v7, %v845_v42  ;;  %v848_v4 = vmax.f32 %v816_v40, %v832_v43 }
 0x114   : > { %898 = vst.msk [vmem:[%s1359_s29 + $0x48] sm:$0xff] %vm888_vm1, %v881_v59  ;;  %v830_v5 = vmax.f32 %v1348_v1, %v789_v61 }
 0x115   : > { %903 = vst.msk [vmem:[%s1359_s29 + $0x70] sm:$0xff] %vm888_vm1, %v886_v3  ;;  %v884_v45 = vmax.f32 %v868_v62, 0.0  ;;  %v871_v46 = vadd.f32 %v1353_v7, %v848_v4 }
 0x116   : > { %v846_v63 = vmax.f32 %v814_v2, %v830_v5 }
 0x117   : > { %901 = vst.msk [vmem:[%s1359_s29 + $0x60] sm:$0xff] %vm888_vm1, %v884_v45  ;;  %v887_v6 = vmax.f32 %v871_v46, 0.0 }
 0x118   : > { %v869_v0 = vadd.f32 %v1353_v7, %v846_v63 }
 0x119   : > { %904 = vst.msk [vmem:[%s1359_s29 + $0x78] sm:$0xff] %vm888_vm1, %v887_v6 }
 0x11a   : > { %v885_v8 = vmax.f32 %v869_v0, 0.0 }
 0x11c   : > { %902 = vst.msk [vmem:[%s1359_s29 + $0x68] sm:$0xff] %vm888_vm1, %v885_v8 }
 0x11d PF: > { %s13_s12 = sadd.s32 1, %s1193_s12  }
 0x11e   : > { %p10_p5 = scmp.ge.s32.totalorder %s13_s12, 6  }
 0x120   :  { %12 = sbr.rel (!%p10_p5) target bundleno = 1 (0x1), region = 62 }

// kernel: cnn_lstm_forward.4
= control target key start
LH: loop header
LB: loop body
LE: loop exit
PB: predicated region body
PF: predicated region fallthrough
CT: control target
= control target key end

     0   :  { %s932_s12 = smov 0   ;;  %s1088_s0 = inlined_call_operand.vmem [shape: bf16[512,144], index: 0, kind: input, shape index: {}]   ;;  %s1089_s1 = inlined_call_operand.vmem [shape: bf16[144,32], index: 1, kind: input, shape index: {}]   ;;  %s1090_s2 = inlined_call_operand.vmem [shape: f32[1,32], index: 2, kind: input, shape index: {}]   ;;  %s1091_s3 = inlined_call_operand.vmem [shape: f32[128,32], index: 3, kind: output, shape index: {}]  }
   0x1 LB: > { %s748_s13 = sadd.s32 4294967295, %s909_s12   ;;  %p752_p0 = scmp.ge.s32.totalorder %s909_s12, 1  ;;  %s909_s12 = sphi %s932_s12, %s13_s12  }
   0x2   : > { %p139_p1 = scmp.lt.s32.totalorder %s909_s12, 3 }
   0x4   : > { %p140_p2 = pnand %p752_p0, %p139_p1 }
   0x5   : > { %s753_s16 = sshll.u32 (!%p140_p2), %s748_s13, 5  ;;  %s756_s10 = sshll.u32 (!%p140_p2), %s748_s13, 3 }
   0x6   : > { %143 = sbr.rel (%p140_p2) target bundleno = 310 (0x136), region = 32  ;;  %p165_p3 = scmp.lt.s32.totalorder (!%p140_p2), %s753_s16, 63 }
   0x7   : > { %p172_p4 = scmp.lt.s32.totalorder (!%p140_p2), %s756_s10, 15 }
   0xb   : > { %v846_v0 = vld [vmem:[%s1089_s1 + $0x38] sm:$0xff]   ;;  %v911_v1 = vmov 0   ;;  %v847_v2 = vld [vmem:[%s1089_s1 + $0x30] sm:$0xff]   ;;  %s1093_s16 = smov (!%p165_p3, %s753_s16), 63  ;;  %v848_v3 = vld [vmem:[%s1089_s1 + $0x28] sm:$0xff]   ;;  %vm426_vm0 = vcmask 130048  }
   0xc   : > { %475 = vmatprep.subr.bf16.mxu0 %v911_v1  ;;  %819 = vmatprep.subr.bf16.mxu1 %v911_v1  ;;  %s818_s21 = sshll.u32 %s1093_s16, 3  ;;  %v849_v4 = vld [vmem:[%s1089_s1 + $0x20] sm:$0xff]   ;;  %v850_v7 = vld [vmem:[%s1089_s1 + $0x18] sm:$0xff]   ;;  %v851_v8 = vld [vmem:[%s1089_s1 + $0x10] sm:$0xff]   ;;  %s1095_s10 = smov (!%p172_p4, %s756_s10), 15  ;;  %vm683_vm1 = vcmask 261120  }
   0xd   : > { %476 = vmatpush1.bf16.msra.mxu0 %v846_v0  ;;  %828 = vmatpush1.bf16.msra.mxu1 %v846_v0  ;;  %s954_s24 = scalar_lea.vmem %s1088_s0, %s818_s21  ;;  %v852_v9 = vld [vmem:[%s1089_s1 + $0x8] sm:$0xff]   ;;  %v853_v10 = vld [vmem:[%s1089_s1] sm:$0xff]   ;;  %s757_s13 = sshll.u32 %s1095_s10, 3 }
   0xe   : > { %477 = vmatprep.subr.bf16.mxu0 %v911_v1  ;;  %820 = vmatprep.subr.bf16.mxu1 %v911_v1  ;;  %v857_v5 = vld [vmem:[%s954_s24 + $0x4] ss:$8 sps:$4 sm:$0xff]   ;;  %v855_v12 = vld [vmem:[%s954_s24] ss:$8 sps:$4 sm:$0xff]   ;;  %v861_v14 = vld [vmem:[%s954_s24 + $0x14] ss:$8 sps:$4 sm:$0xff]   ;;  %s1051_s17 = scalar_lea.vmem %s1091_s3, %s757_s13 }
   0xf   : > { %v860_v6 = vld [vmem:[%s954_s24 + $0x84] ss:$8 sps:$4 sm:$0xff]   ;;  %799 = vmatprep.mubr.msk.bf16.mxu0 %vm426_vm0, %v857_v5  ;;  %v858_v13 = vld [vmem:[%s954_s24 + $0x80] ss:$8 sps:$4 sm:$0xff]   ;;  %v863_v15 = vld [vmem:[%s954_s24 + $0x94] ss:$8 sps:$4 sm:$0xff]  }
  0x10   : > { %807 = vmatprep.mubr.msk.bf16.mxu1 %vm426_vm0, %v860_v6  ;;  %v854_v11 = vld [vmem:[%s1089_s1 + $0x40] sm:$0xff]   ;;  %v865_v16 = vld [vmem:[%s954_s24 + $0x10] ss:$8 sps:$4 sm:$0xff]   ;;  %v873_v22 = vld [vmem:[%s954_s24 + $0x34] ss:$8 sps:$4 sm:$0xff]  }
  0x11   : > { %478 = vmatpush1.bf16.msra.mxu0 %v847_v2  ;;  %829 = vmatpush1.bf16.msra.mxu1 %v847_v2  ;;  %v866_v17 = vld [vmem:[%s954_s24 + $0x90] ss:$8 sps:$4 sm:$0xff]   ;;  %v867_v18 = vld [vmem:[%s954_s24 + $0x24] ss:$8 sps:$4 sm:$0xff]   ;;  %v871_v20 = vld [vmem:[%s954_s24 + $0x20] ss:$8 sps:$4 sm:$0xff]  }
  0x12   : > { %479 = vmatprep.subr.bf16.mxu0 %v911_v1  ;;  %821 = vmatprep.subr.bf16.mxu1 %v911_v1  ;;  %v869_v19 = vld [vmem:[%s954_s24 + $0xa4] ss:$8 sps:$4 sm:$0xff]   ;;  %v872_v21 = vld [vmem:[%s954_s24 + $0xa0] ss:$8 sps:$4 sm:$0xff]   ;;  %v875_v23 = vld [vmem:[%s954_s24 + $0xb4] ss:$8 sps:$4 sm:$0xff]  }
  0x13   : > { %v877_v24 = vld [vmem:[%s954_s24 + $0x30] ss:$8 sps:$4 sm:$0xff]   ;;  %v879_v26 = vld [vmem:[%s954_s24 + $0x44] ss:$8 sps:$4 sm:$0xff]   ;;  %v883_v28 = vld [vmem:[%s954_s24 + $0x40] ss:$8 sps:$4 sm:$0xff]  }
  0x14   : > { %v878_v25 = vld [vmem:[%s954_s24 + $0xb0] ss:$8 sps:$4 sm:$0xff]   ;;  %v881_v27 = vld [vmem:[%s954_s24 + $0xc4] ss:$8 sps:$4 sm:$0xff]   ;;  %v884_v29 = vld [vmem:[%s954_s24 + $0xc0] ss:$8 sps:$4 sm:$0xff]  }
  0x15   : > { %480 = vmatpush1.bf16.msra.mxu0 %v848_v3  ;;  %830 = vmatpush1.bf16.msra.mxu1 %v848_v3  ;;  %v885_v30 = vld [vmem:[%s954_s24 + $0x54] ss:$8 sps:$4 sm:$0xff]   ;;  %v889_v32 = vld [vmem:[%s954_s24 + $0x50] ss:$8 sps:$4 sm:$0xff]   ;;  %v891_v34 = vld [vmem:[%s954_s24 + $0x64] ss:$8 sps:$4 sm:$0xff]  }
  0x16   : > { %481 = vmatprep.subr.bf16.mxu0 %v911_v1  ;;  %822 = vmatprep.subr.bf16.mxu1 %v911_v1  ;;  %v887_v31 = vld [vmem:[%s954_s24 + $0xd4] ss:$8 sps:$4 sm:$0xff]   ;;  %v890_v33 = vld [vmem:[%s954_s24 + $0xd0] ss:$8 sps:$4 sm:$0xff]   ;;  %v893_v35 = vld [vmem:[%s954_s24 + $0xe4] ss:$8 sps:$4 sm:$0xff]  }
  0x17   : > { %v895_v36 = vld [vmem:[%s954_s24 + $0x60] ss:$8 sps:$4 sm:$0xff]   ;;  %v897_v38 = vld [vmem:[%s954_s24 + $0x74] ss:$8 sps:$4 sm:$0xff]   ;;  %v901_v40 = vld [vmem:[%s954_s24 + $0x70] ss:$8 sps:$4 sm:$0xff]  }
  0x18   : > { %v896_v37 = vld [vmem:[%s954_s24 + $0xe0] ss:$8 sps:$4 sm:$0xff]   ;;  %v899_v39 = vld [vmem:[%s954_s24 + $0xf4] ss:$8 sps:$4 sm:$0xff]   ;;  %v902_v41 = vld [vmem:[%s954_s24 + $0xf0] ss:$8 sps:$4 sm:$0xff]  }
  0x19   : > { %482 = vmatpush1.bf16.msra.mxu0 %v849_v4  ;;  %831 = vmatpush1.bf16.msra.mxu1 %v849_v4 }
  0x1a   : > { %483 = vmatprep.subr.bf16.mxu0 %v911_v1  ;;  %823 = vmatprep.subr.bf16.mxu1 %v911_v1 }
  0x1d   : > { %484 = vmatpush1.bf16.msra.mxu0 %v850_v7  ;;  %832 = vmatpush1.bf16.msra.mxu1 %v850_v7 }
  0x1e   : > { %485 = vmatprep.subr.bf16.mxu0 %v911_v1  ;;  %824 = vmatprep.subr.bf16.mxu1 %v911_v1 }
  0x21   : > { %486 = vmatpush1.bf16.msra.mxu0 %v851_v8  ;;  %833 = vmatpush1.bf16.msra.mxu1 %v851_v8 }
  0x22   : > { %487 = vmatprep.subr.bf16.mxu0 %v911_v1  ;;  %825 = vmatprep.subr.bf16.mxu1 %v911_v1 }
  0x25   : > { %488 = vmatpush1.bf16.msra.mxu0 %v852_v9  ;;  %834 = vmatpush1.bf16.msra.mxu1 %v852_v9 }
  0x26   : > { %489 = vmatprep.subr.bf16.mxu0 %v911_v1  ;;  %826 = vmatprep.subr.bf16.mxu1 %v911_v1 }
  0x29   : > { %490 = vmatpush1.bf16.msra.mxu0 %v853_v10  ;;  %835 = vmatpush1.bf16.msra.mxu1 %v853_v10 }
  0x2a   : > { %505 = vmatprep.subr.bf16.mxu0 %v911_v1  ;;  %827 = vmatprep.subr.bf16.mxu1 %v911_v1 }
  0x2d   : > { %506 = vmatpush2.bf16.msra.mxu0 %v854_v11  ;;  %836 = vmatpush2.bf16.msra.mxu1 %v854_v11 }
  0x30   : > { %508 = vmatmul.mubr.bf16.vlgmr.msra.gmra.mxu0 %v855_v12  ;;  %572 = vmatmul.mubr.bf16.vlgmr.msra.gmra.mxu1 %v858_v13 }
  0x31   : > { %800 = vmatprep.mubr.msk.bf16.mxu0 %vm426_vm0, %v861_v14  ;;  %808 = vmatprep.mubr.msk.bf16.mxu1 %vm426_vm0, %v863_v15  ;;  %v1045_v14 = vld [vmem:[%s1090_s2] ss:$0 sm:$0xff] }
  0x38   : > { %516 = vmatmul.mubr.bf16.gmra.mxu0 %v865_v16  ;;  %580 = vmatmul.mubr.bf16.gmra.mxu1 %v866_v17 }
  0x39   : > { %801 = vmatprep.mubr.msk.bf16.mxu0 %vm426_vm0, %v867_v18  ;;  %809 = vmatprep.mubr.msk.bf16.mxu1 %vm426_vm0, %v869_v19 }
  0x40   : > { %524 = vmatmul.mubr.bf16.gmra.mxu0 %v871_v20  ;;  %588 = vmatmul.mubr.bf16.gmra.mxu1 %v872_v21 }
  0x41   : > { %802 = vmatprep.mubr.msk.bf16.mxu0 %vm426_vm0, %v873_v22  ;;  %810 = vmatprep.mubr.msk.bf16.mxu1 %vm426_vm0, %v875_v23 }
  0x48   : > { %532 = vmatmul.mubr.bf16.gmra.mxu0 %v877_v24  ;;  %596 = vmatmul.mubr.bf16.gmra.mxu1 %v878_v25 }
  0x49   : > { %803 = vmatprep.mubr.msk.bf16.mxu0 %vm426_vm0, %v879_v26  ;;  %811 = vmatprep.mubr.msk.bf16.mxu1 %vm426_vm0, %v881_v27 }
  0x50   : > { %540 = vmatmul.mubr.bf16.gmra.mxu0 %v883_v28  ;;  %604 = vmatmul.mubr.bf16.gmra.mxu1 %v884_v29 }
  0x51   : > { %804 = vmatprep.mubr.msk.bf16.mxu0 %vm426_vm0, %v885_v30  ;;  %812 = vmatprep.mubr.msk.bf16.mxu1 %vm426_vm0, %v887_v31 }
  0x58   : > { %548 = vmatmul.mubr.bf16.gmra.mxu0 %v889_v32  ;;  %612 = vmatmul.mubr.bf16.gmra.mxu1 %v890_v33 }
  0x59   : > { %805 = vmatprep.mubr.msk.bf16.mxu0 %vm426_vm0, %v891_v34  ;;  %813 = vmatprep.mubr.msk.bf16.mxu1 %vm426_vm0, %v893_v35 }
  0x60   : > { %556 = vmatmul.mubr.bf16.gmra.mxu0 %v895_v36  ;;  %620 = vmatmul.mubr.bf16.gmra.mxu1 %v896_v37 }
  0x61   : > { %806 = vmatprep.mubr.msk.bf16.mxu0 %vm426_vm0, %v897_v38  ;;  %814 = vmatprep.mubr.msk.bf16.mxu1 %vm426_vm0, %v899_v39 }
  0x68   : > { %564 = vmatmul.mubr.bf16.gmra.mxu0 %v901_v40  ;;  %628 = vmatmul.mubr.bf16.gmra.mxu1 %v902_v41 }
  0xf0   : > { %v509_v42 = vpop.f32.mrf.mxu0  ;;  %v573_v43 = vpop.f32.mrf.mxu1 }
  0xf2   : > { %v511_v44 = vpop.f32.mrf.mxu0  ;;  %v575_v45 = vpop.f32.mrf.mxu1 }
  0xf4   : > { %v512_v46 = vpop.f32.mrf.mxu0  ;;  %v576_v47 = vpop.f32.mrf.mxu1 }
  0xf6   : > { %v514_v48 = vpop.f32.mrf.mxu0  ;;  %v578_v49 = vpop.f32.mrf.mxu1 }
  0xf8   : > { %v517_v50 = vpop.f32.mrf.mxu0  ;;  %v581_v51 = vpop.f32.mrf.mxu1 }
  0xfa   : > { %v519_v52 = vpop.f32.mrf.mxu0  ;;  %v583_v53 = vpop.f32.mrf.mxu1 }
  0xfc   : > { %v1022_v54 = vpop.f32.mrf.mxu0  ;;  %v584_v55 = vpop.f32.mrf.mxu1 }
  0xfe   : > { %v522_v56 = vpop.f32.mrf.mxu0  ;;  %v586_v57 = vpop.f32.mrf.mxu1 }
 0x100   : > { %v1024_v58 = vpop.f32.mrf.mxu0  ;;  %v1026_v59 = vpop.f32.mrf.mxu1 }
 0x102   : > { %v527_v60 = vpop.f32.mrf.mxu0  ;;  %v591_v61 = vpop.f32.mrf.mxu1 }
 0x104   : > { %v1028_v62 = vpop.f32.mrf.mxu0  ;;  %v1030_v63 = vpop.f32.mrf.mxu1 }
 0x106   : > { %v530_v0 = vpop.f32.mrf.mxu0  ;;  %v594_v1 = vpop.f32.mrf.mxu1 }
 0x108   : > { %v1032_v2 = vpop.f32.mrf.mxu0  ;;  %v1034_v3 = vpop.f32.mrf.mxu1 }
 0x10a   : > { %v535_v4 = vpop.f32.mrf.mxu0  ;;  %v599_v5 = vpop.f32.mrf.mxu1 }
 0x10c   : > { %v1038_v6 = vpop.f32.mrf.mxu0  ;;  %v1040_v7 = vpop.f32.mrf.mxu1 }
 0x10e   : > { %v538_v8 = vpop.f32.mrf.mxu0  ;;  %v602_v9 = vpop.f32.mrf.mxu1 }
 0x110   : > { %v541_v10 = vpop.f32.mrf.mxu0  ;;  %v605_v11 = vpop.f32.mrf.mxu1 }
 0x111   : > { %v636_v12 = vmax.f32 %v509_v42, %v541_v10  ;;  %v644_v13 = vmax.f32 %v573_v43, %v605_v11 }
 0x112   : > { %v543_v15 = vpop.f32.mrf.mxu0  ;;  %v607_v16 = vpop.f32.mrf.mxu1 }
 0x113   : > { %v652_v17 = vmax.f32 %v636_v12, %v644_v13 }
 0x114   : > { %v544_v18 = vpop.f32.mrf.mxu0  ;;  %v608_v19 = vpop.f32.mrf.mxu1 }
 0x115   : > { %v667_v20 = vadd.f32 %v1045_v14, %v652_v17  ;;  %v637_v21 = vmax.f32 %v512_v46, %v544_v18  ;;  %v645_v22 = vmax.f32 %v576_v47, %v608_v19 }
 0x116   : > { %v546_v23 = vpop.f32.mrf.mxu0  ;;  %v610_v24 = vpop.f32.mrf.mxu1 }
 0x117   : > { %v675_v25 = vmax.f32 %v667_v20, 0.0  ;;  %v653_v26 = vmax.f32 %v637_v21, %v645_v22 }
 0x118   : > { %v549_v27 = vpop.f32.mrf.mxu0  ;;  %v613_v28 = vpop.f32.mrf.mxu1 }
 0x119   : > { %684 = vst.msk [vmem:[%s1051_s17] sm:$0xff] %vm683_vm1, %v675_v25  ;;  %v668_v29 = vadd.f32 %v1045_v14, %v653_v26  ;;  %v638_v30 = vmax.f32 %v517_v50, %v549_v27  ;;  %v646_v31 = vmax.f32 %v581_v51, %v613_v28 }
 0x11a   : > { %v551_v32 = vpop.f32.mrf.mxu0  ;;  %v615_v33 = vpop.f32.mrf.mxu1 }
 0x11b   : > { %v676_v34 = vmax.f32 %v668_v29, 0.0  ;;  %v654_v35 = vmax.f32 %v638_v30, %v646_v31 }
 0x11c   : > { %v552_v36 = vpop.f32.mrf.mxu0  ;;  %v616_v37 = vpop.f32.mrf.mxu1 }
 0x11d   : > { %685 = vst.msk [vmem:[%s1051_s17 + $0x8] sm:$0xff] %vm683_vm1, %v676_v34  ;;  %v669_v38 = vadd.f32 %v1045_v14, %v654_v35  ;;  %v639_v39 = vmax.f32 %v1022_v54, %v552_v36  ;;  %v647_v40 = vmax.f32 %v584_v55, %v616_v37 }
 0x11e   : > { %v554_v41 = vpop.f32.mrf.mxu0  ;;  %v618_v42 = vpop.f32.mrf.mxu1 }
 0x11f   : > { %v677_v43 = vmax.f32 %v669_v38, 0.0  ;;  %v655_v44 = vmax.f32 %v639_v39, %v647_v40 }
 0x120   : > { %v557_v45 = vpop.f32.mrf.mxu0  ;;  %v621_v46 = vpop.f32.mrf.mxu1 }
 0x121   : > { %686 = vst.msk [vmem:[%s1051_s17 + $0x10] sm:$0xff] %vm683_vm1, %v677_v43  ;;  %v670_v47 = vadd.f32 %v1045_v14, %v655_v44  ;;  %v640_v48 = vmax.f32 %v1024_v58, %v557_v45  ;;  %v648_v49 = vmax.f32 %v1026_v59, %v621_v46 }
 0x122   : > { %v559_v50 = vpop.f32.mrf.mxu0  ;;  %v623_v51 = vpop.f32.mrf.mxu1 }
 0x123   : > { %v678_v52 = vmax.f32 %v670_v47, 0.0  ;;  %v656_v53 = vmax.f32 %v640_v48, %v648_v49 }
 0x124   : > { %v560_v54 = vpop.f32.mrf.mxu0  ;;  %v624_v55 = vpop.f32.mrf.mxu1 }
 0x125   : > { %687 = vst.msk [vmem:[%s1051_s17 + $0x18] sm:$0xff] %vm683_vm1, %v678_v52  ;;  %v671_v56 = vadd.f32 %v1045_v14, %v656_v53  ;;  %v641_v57 = vmax.f32 %v1028_v62, %v560_v54  ;;  %v649_v60 = vmax.f32 %v1030_v63, %v624_v55 }
 0x126   : > { %v562_v61 = vpop.f32.mrf.mxu0  ;;  %v626_v58 = vpop.f32.mrf.mxu1 }
 0x127   : > { %v679_v0 = vmax.f32 %v671_v56, 0.0  ;;  %v657_v59 = vmax.f32 %v641_v57, %v649_v60 }
 0x128   : > { %v565_v1 = vpop.f32.mrf.mxu0  ;;  %v629_v4 = vpop.f32.mrf.mxu1 }
 0x129   : > { %688 = vst.msk [vmem:[%s1051_s17 + $0x20] sm:$0xff] %vm683_vm1, %v679_v0  ;;  %v672_v5 = vadd.f32 %v1045_v14, %v657_v59  ;;  %v642_v8 = vmax.f32 %v1032_v2, %v565_v1  ;;  %v650_v9 = vmax.f32 %v1034_v3, %v629_v4 }
 0x12a   : > { %v567_v10 = vpop.f32.mrf.mxu0  ;;  %v631_v62 = vpop.f32.mrf.mxu1 }
 0x12b   : > { %v680_v63 = vmax.f32 %v672_v5, 0.0  ;;  %v658_v11 = vmax.f32 %v642_v8, %v650_v9 }
 0x12c   : > { %v568_v12 = vpop.f32.mrf.mxu0  ;;  %v632_v13 = vpop.f32.mrf.mxu1 }
 0x12d   : > { %689 = vst.msk [vmem:[%s1051_s17 + $0x28] sm:$0xff] %vm683_vm1, %v680_v63  ;;  %v673_v15 = vadd.f32 %v1045_v14, %v658_v11  ;;  %v643_v16 = vmax.f32 %v1038_v6, %v568_v12  ;;  %v651_v17 = vmax.f32 %v1040_v7, %v632_v13 }
 0x12e   : > { %v570_v18 = vpop.f32.mrf.mxu0  ;;  %v634_v2 = vpop.f32.mrf.mxu1 }
 0x12f   : > { %v681_v19 = vmax.f32 %v673_v15, 0.0  ;;  %v659_v20 = vmax.f32 %v643_v16, %v651_v17 }
 0x131   : > { %690 = vst.msk [vmem:[%s1051_s17 + $0x30] sm:$0xff] %vm683_vm1, %v681_v19  ;;  %v674_v3 = vadd.f32 %v1045_v14, %v659_v20 }
 0x133   : > { %v682_v21 = vmax.f32 %v674_v3, 0.0 }
 0x135   : > { %691 = vst.msk [vmem:[%s1051_s17 + $0x38] sm:$0xff] %vm683_vm1, %v682_v21 }
 0x136 PF: > { %s13_s12 = sadd.s32 1, %s909_s12  }
 0x137   : > { %p10_p5 = scmp.ge.s32.totalorder %s13_s12, 4  }
 0x139   :  { %12 = sbr.rel (!%p10_p5) target bundleno = 1 (0x1), region = 62 }

// kernel: cnn_lstm_forward.5
= control target key start
LH: loop header
LB: loop body
LE: loop exit
PB: predicated region body
PF: predicated region fallthrough
CT: control target
= control target key end

     0   :  { %s1320_s0 = inlined_call_operand.vmem [shape: f32[8,512], index: 0, kind: input, shape index: {}]   ;;  %s1321_s1 = inlined_call_operand.vmem [shape: f32[512,128], index: 1, kind: input, shape index: {}]   ;;  %s1322_s2 = inlined_call_operand.vmem [shape: f32[1,128], index: 2, kind: input, shape index: {}]   ;;  %s1323_s3 = inlined_call_operand.vmem [shape: f32[32,128], index: 3, kind: input, shape index: {}]   ;;  %s1324_s4 = inlined_call_operand.vmem [shape: f32[32,5], index: 4, kind: input, shape index: {}]   ;;  %s1325_s5 = inlined_call_operand.vmem [shape: f32[1,5], index: 5, kind: input, shape index: {}]   ;;  %s1326_s6 = inlined_call_operand.hbm [shape: f32[2,5], index: 6, kind: output, shape index: {}]  }
   0x1   :  { %v59_v0 = vld [vmem:[%s1321_s1 + $0xf8] sm:$0xff]  ;;  %v58_v4 = vld [vmem:[%s1321_s1 + $0xf0] sm:$0xff]  ;;  %v57_v8 = vld [vmem:[%s1321_s1 + $0xe8] sm:$0xff] }
   0x2   :  { %v91_v1 = vld [vmem:[%s1321_s1 + $0x1f8] sm:$0xff]  ;;  %759 = vmatprep.subr.mxu0 %v59_v0  ;;  %v90_v5 = vld [vmem:[%s1321_s1 + $0x1f0] sm:$0xff]  ;;  %v89_v9 = vld [vmem:[%s1321_s1 + $0x1e8] sm:$0xff] }
   0x3   :  { %v43_v2 = vld [vmem:[%s1321_s1 + $0x78] sm:$0xff]  ;;  %794 = vmatprep.subr.mxu1 %v91_v1  ;;  %v42_v6 = vld [vmem:[%s1321_s1 + $0x70] sm:$0xff]  ;;  %v41_v10 = vld [vmem:[%s1321_s1 + $0x68] sm:$0xff] }
   0x4   :  { %v75_v3 = vld [vmem:[%s1321_s1 + $0x178] sm:$0xff]  ;;  %760 = vmatpush3.msra.mxu0 %v43_v2  ;;  %v74_v7 = vld [vmem:[%s1321_s1 + $0x170] sm:$0xff]  ;;  %v73_v11 = vld [vmem:[%s1321_s1 + $0x168] sm:$0xff] }
   0x5   :  { %795 = vmatpush3.msra.mxu1 %v75_v3  ;;  %761 = vmatprep.subr.mxu0 %v58_v4  ;;  %v56_v12 = vld [vmem:[%s1321_s1 + $0xe0] sm:$0xff]  ;;  %v55_v16 = vld [vmem:[%s1321_s1 + $0xd8] sm:$0xff]  ;;  %v54_v20 = vld [vmem:[%s1321_s1 + $0xd0] sm:$0xff] }
   0x6   :  { %796 = vmatprep.subr.mxu1 %v90_v5  ;;  %762 = vmatpush3.msra.mxu0 %v42_v6  ;;  %v88_v13 = vld [vmem:[%s1321_s1 + $0x1e0] sm:$0xff]  ;;  %v87_v17 = vld [vmem:[%s1321_s1 + $0x1d8] sm:$0xff]  ;;  %v86_v21 = vld [vmem:[%s1321_s1 + $0x1d0] sm:$0xff] }
   0x7   :  { %797 = vmatpush3.msra.mxu1 %v74_v7  ;;  %763 = vmatprep.subr.mxu0 %v57_v8  ;;  %v40_v14 = vld [vmem:[%s1321_s1 + $0x60] sm:$0xff]  ;;  %v39_v18 = vld [vmem:[%s1321_s1 + $0x58] sm:$0xff]  ;;  %v38_v22 = vld [vmem:[%s1321_s1 + $0x50] sm:$0xff] }
   0x8   :  { %798 = vmatprep.subr.mxu1 %v89_v9  ;;  %v72_v15 = vld [vmem:[%s1321_s1 + $0x160] sm:$0xff]  ;;  %764 = vmatpush3.msra.mxu0 %v41_v10  ;;  %v71_v19 = vld [vmem:[%s1321_s1 + $0x158] sm:$0xff]  ;;  %v70_v23 = vld [vmem:[%s1321_s1 + $0x150] sm:$0xff] }
   0x9   :  { %799 = vmatpush3.msra.mxu1 %v73_v11  ;;  %765 = vmatprep.subr.mxu0 %v56_v12  ;;  %v53_v24 = vld [vmem:[%s1321_s1 + $0xc8] sm:$0xff]  ;;  %v52_v28 = vld [vmem:[%s1321_s1 + $0xc0] sm:$0xff]  ;;  %v51_v32 = vld [vmem:[%s1321_s1 + $0xb8] sm:$0xff] }
   0xa   :  { %800 = vmatprep.subr.mxu1 %v88_v13  ;;  %766 = vmatpush3.msra.mxu0 %v40_v14  ;;  %v85_v25 = vld [vmem:[%s1321_s1 + $0x1c8] sm:$0xff]  ;;  %v84_v29 = vld [vmem:[%s1321_s1 + $0x1c0] sm:$0xff]  ;;  %v83_v33 = vld [vmem:[%s1321_s1 + $0x1b8] sm:$0xff] }
   0xb   :  { %801 = vmatpush3.msra.mxu1 %v72_v15  ;;  %767 = vmatprep.subr.mxu0 %v55_v16  ;;  %v37_v26 = vld [vmem:[%s1321_s1 + $0x48] sm:$0xff]  ;;  %v36_v30 = vld [vmem:[%s1321_s1 + $0x40] sm:$0xff]  ;;  %v35_v34 = vld [vmem:[%s1321_s1 + $0x38] sm:$0xff] }
   0xc   :  { %802 = vmatprep.subr.mxu1 %v87_v17  ;;  %768 = vmatpush3.msra.mxu0 %v39_v18  ;;  %v69_v27 = vld [vmem:[%s1321_s1 + $0x148] sm:$0xff]  ;;  %v68_v31 = vld [vmem:[%s1321_s1 + $0x140] sm:$0xff]  ;;  %v67_v35 = vld [vmem:[%s1321_s1 + $0x138] sm:$0xff] }
   0xd   :  { %803 = vmatpush3.msra.mxu1 %v71_v19  ;;  %769 = vmatprep.subr.mxu0 %v54_v20  ;;  %v50_v36 = vld [vmem:[%s1321_s1 + $0xb0] sm:$0xff]  ;;  %v49_v40 = vld [vmem:[%s1321_s1 + $0xa8] sm:$0xff]  ;;  %v48_v44 = vld [vmem:[%s1321_s1 + $0xa0] sm:$0xff] }
   0xe   :  { %804 = vmatprep.subr.mxu1 %v86_v21  ;;  %770 = vmatpush3.msra.mxu0 %v38_v22  ;;  %v82_v37 = vld [vmem:[%s1321_s1 + $0x1b0] sm:$0xff]  ;;  %v81_v41 = vld [vmem:[%s1321_s1 + $0x1a8] sm:$0xff]  ;;  %v80_v45 = vld [vmem:[%s1321_s1 + $0x1a0] sm:$0xff] }
   0xf   :  { %805 = vmatpush3.msra.mxu1 %v70_v23  ;;  %771 = vmatprep.subr.mxu0 %v53_v24  ;;  %v34_v38 = vld [vmem:[%s1321_s1 + $0x30] sm:$0xff]  ;;  %v33_v42 = vld [vmem:[%s1321_s1 + $0x28] sm:$0xff]  ;;  %v32_v46 = vld [vmem:[%s1321_s1 + $0x20] sm:$0xff] }
  0x10   :  { %806 = vmatprep.subr.mxu1 %v85_v25  ;;  %772 = vmatpush3.msra.mxu0 %v37_v26  ;;  %v66_v39 = vld [vmem:[%s1321_s1 + $0x130] sm:$0xff]  ;;  %v65_v43 = vld [vmem:[%s1321_s1 + $0x128] sm:$0xff]  ;;  %v64_v47 = vld [vmem:[%s1321_s1 + $0x120] sm:$0xff] }
  0x11   :  { %807 = vmatpush3.msra.mxu1 %v69_v27  ;;  %773 = vmatprep.subr.mxu0 %v52_v28  ;;  %v47_v48 = vld [vmem:[%s1321_s1 + $0x98] sm:$0xff]  ;;  %v46_v52 = vld [vmem:[%s1321_s1 + $0x90] sm:$0xff] }
  0x12   :  { %808 = vmatprep.subr.mxu1 %v84_v29  ;;  %774 = vmatpush3.msra.mxu0 %v36_v30  ;;  %v79_v49 = vld [vmem:[%s1321_s1 + $0x198] sm:$0xff]  ;;  %v78_v53 = vld [vmem:[%s1321_s1 + $0x190] sm:$0xff] }
  0x13   :  { %809 = vmatpush3.msra.mxu1 %v68_v31  ;;  %775 = vmatprep.subr.mxu0 %v51_v32  ;;  %v31_v50 = vld [vmem:[%s1321_s1 + $0x18] sm:$0xff] }
  0x14   :  { %810 = vmatprep.subr.mxu1 %v83_v33  ;;  %776 = vmatpush3.msra.mxu0 %v35_v34  ;;  %v63_v51 = vld [vmem:[%s1321_s1 + $0x118] sm:$0xff] }
  0x15   :  { %811 = vmatpush3.msra.mxu1 %v67_v35  ;;  %777 = vmatprep.subr.mxu0 %v50_v36 }
  0x16   :  { %812 = vmatprep.subr.mxu1 %v82_v37  ;;  %778 = vmatpush3.msra.mxu0 %v34_v38 }
  0x17   :  { %813 = vmatpush3.msra.mxu1 %v66_v39  ;;  %779 = vmatprep.subr.mxu0 %v49_v40 }
  0x18   :  { %814 = vmatprep.subr.mxu1 %v81_v41  ;;  %780 = vmatpush3.msra.mxu0 %v33_v42 }
  0x19   :  { %815 = vmatpush3.msra.mxu1 %v65_v43  ;;  %781 = vmatprep.subr.mxu0 %v48_v44 }
  0x1a   :  { %816 = vmatprep.subr.mxu1 %v80_v45  ;;  %782 = vmatpush3.msra.mxu0 %v32_v46 }
  0x1b   :  { %817 = vmatpush3.msra.mxu1 %v64_v47 }
  0x1c   :  { %11 = vsyncpa [#allocation4], 0  ;;  %783 = vmatprep.subr.mxu0 %v47_v48  ;;  %818 = vmatprep.subr.mxu1 %v79_v49  ;;  %v30_v54 = vld [vmem:[%s1321_s1 + $0x10] sm:$0xff]  ;;  %v45_v56 = vld [vmem:[%s1321_s1 + $0x88] sm:$0xff]  ;;  %v968_v5 = vmov 0.0   ;;  %vm969_vm0 = vmmov 0  }
  0x1d   :  { %v62_v55 = vld [vmem:[%s1321_s1 + $0x110] sm:$0xff]  ;;  %784 = vmatpush3.msra.mxu0 %v31_v50  ;;  %819 = vmatpush3.msra.mxu1 %v63_v51  ;;  %v77_v57 = vld [vmem:[%s1321_s1 + $0x188] sm:$0xff]  ;;  %v44_v60 = vld [vmem:[%s1321_s1 + $0x80] sm:$0xff]  ;;  %s970_s20 = smov 64   ;;  %vm245_vm1 = vcmask 261120   ;;  %s972_s7 = smov [#allocation3]  }
  0x1e   :  { %785 = vmatprep.subr.mxu0 %v46_v52  ;;  %820 = vmatprep.subr.mxu1 %v78_v53  ;;  %v29_v58 = vld [vmem:[%s1321_s1 + $0x8] sm:$0xff]  ;;  %v76_v61 = vld [vmem:[%s1321_s1 + $0x180] sm:$0xff]  ;;  %v27_v1 = vld [vmem:[%s1320_s0 + $0x18] sm:$0xff]  ;;  %vm733_vm2 = vcmask 33792  }
  0x1f   :  { %v61_v59 = vld [vmem:[%s1321_s1 + $0x108] sm:$0xff]  ;;  %786 = vmatpush3.msra.mxu0 %v30_v54  ;;  %821 = vmatpush3.msra.mxu1 %v62_v55  ;;  %v28_v62 = vld [vmem:[%s1321_s1] sm:$0xff]  ;;  %v26_v3 = vld [vmem:[%s1320_s0 + $0x10] sm:$0xff] }
  0x20   :  { %787 = vmatprep.subr.mxu0 %v45_v56  ;;  %822 = vmatprep.subr.mxu1 %v77_v57  ;;  %v25_v63 = vld [vmem:[%s1320_s0 + $0x8] sm:$0xff]  ;;  %v60_v0 = vld [vmem:[%s1321_s1 + $0x100] sm:$0xff]  ;;  %v1215_v4 = vld [vmem:[%s1323_s3 + $0x18] sm:$0xff] }
  0x21   :  { %788 = vmatpush3.msra.mxu0 %v29_v58  ;;  %823 = vmatpush3.msra.mxu1 %v61_v59  ;;  %v24_v2 = vld [vmem:[%s1320_s0] sm:$0xff]  ;;  %v1221_v6 = vld [vmem:[%s1323_s3 + $0x10] sm:$0xff]  ;;  %v1231_v7 = vld [vmem:[%s1323_s3 + $0x8] sm:$0xff] }
  0x22   :  { %789 = vmatprep.subr.mxu0 %v44_v60  ;;  %824 = vmatprep.subr.mxu1 %v76_v61  ;;  %v1240_v8 = vld [vmem:[%s1323_s3] sm:$0xff] }
  0x23   :  { %790 = vmatpush3.msra.mxu0 %v28_v62  ;;  %163 = vmatprep.mubr.f32.mxu0 %v25_v63  ;;  %v749_v11 = vld [vmem:[%s1322_s2] ss:$0 sm:$0xff]  ;;  %s971_s2 = smov 32  }
  0x24   :  { %825 = vmatpush3.msra.mxu1 %v60_v0  ;;  %233 = vmatprep.mubr.f32.mxu1 %v27_v1 }
  0x25   :  { %164 = vmatmul.mubr.f32.vlgmr.msra.gmra.mxu0 %v24_v2  ;;  %234 = vmatmul.mubr.f32.vlgmr.msra.gmra.mxu1 %v26_v3 }
  0x26   :  { %854 = vmatprep.subr.mxu0 %v968_v5  ;;  %862 = vmatprep.mubr.msk.f32.mxu0 %vm969_vm0, %v968_v5 }
  0x27   :  { %855 = vmatpush3.msra.mxu0 %v1215_v4  ;;  %865 = vmatprep.subr.mxu1 %v968_v5 }
  0x28   :  { %856 = vmatprep.subr.mxu0 %v968_v5  ;;  %866 = vmatpush3.msra.mxu1 %v1215_v4 }
  0x29   :  { %857 = vmatpush3.msra.mxu0 %v1221_v6  ;;  %867 = vmatprep.subr.mxu1 %v968_v5 }
  0x2a   :  { %858 = vmatprep.subr.mxu0 %v968_v5  ;;  %868 = vmatpush3.msra.mxu1 %v1221_v6 }
  0x2b   :  { %859 = vmatpush3.msra.mxu0 %v1231_v7  ;;  %869 = vmatprep.subr.mxu1 %v968_v5 }
  0x2c   :  { %860 = vmatprep.subr.mxu0 %v968_v5  ;;  %870 = vmatpush3.msra.mxu1 %v1231_v7 }
  0x2d   :  { %861 = vmatpush3.msra.mxu0 %v1240_v8  ;;  %871 = vmatprep.subr.mxu1 %v968_v5 }
  0x2e   :  { %863 = vmatmul.mubr.f32.vlgmr.msra.gmra.mxu0 %v968_v5  ;;  %872 = vmatpush3.msra.mxu1 %v1240_v8 }
  0x2f   :  { %873 = vmatprep.mubr.msk.f32.mxu1 %vm969_vm0, %v968_v5  ;;  %876 = vmatprep.subr.mxu0 %v968_v5 }
  0x30   :  { %877 = vmatpush3.msra.mxu0 %v1215_v4  ;;  %884 = vmatprep.mubr.msk.f32.mxu0 %vm969_vm0, %v968_v5 }
  0x31   :  { %878 = vmatprep.subr.mxu0 %v968_v5  ;;  %887 = vmatprep.subr.mxu1 %v968_v5 }
  0x32   :  { %879 = vmatpush3.msra.mxu0 %v1221_v6 }
  0x33   :  { %880 = vmatprep.subr.mxu0 %v968_v5 }
  0x34   :  { %881 = vmatpush3.msra.mxu0 %v1231_v7 }
  0x35   :  { %882 = vmatprep.subr.mxu0 %v968_v5 }
  0x36   :  { %883 = vmatpush3.msra.mxu0 %v1240_v8 }
  0x37   :  { %898 = vmatprep.subr.mxu0 %v968_v5 }
  0xe5   :  { %v791_v9 = vpop.f32.mrf.mxu0  ;;  %v826_v10 = vpop.f32.mrf.mxu1 }
  0xe7   :  { %v792_v12 = vpop.f32.mrf.mxu0  ;;  %v827_v13 = vpop.f32.mrf.mxu1 }
  0xe8   :  { %v793_v14 = vadd.f32 %v792_v12, %v791_v9  ;;  %v828_v16 = vadd.f32 %v827_v13, %v826_v10 }
  0xea   :  { %v166_v15 = vadd.f32 %v793_v14, %v749_v11 }
  0xec   :  { %v236_v17 = vadd.f32 %v828_v16, %v166_v15 }
  0xee   :  { %239 = vst [vmem:[#allocation2] sm:$0xff] %v236_v17  ;;  %v315_v18 = vpop.f32.mrf.mxu0 }
  0xf0   :  { %v864_v19 = vpop.f32.mrf.mxu0 }
  0xf5   :  { %v244_v20 = vld [vmem:[#allocation2] sm:$0x3]  ;;  %v344_v36 = vld [vmem:[#allocation2 + $0x2] sm:$0x3]  ;;  %v445_v54 = vld [vmem:[#allocation2 + $0x4] sm:$0x3] }
  0xf6   :  { %v319_v21 = vadd.f32 %v315_v18, %v244_v20  ;;  %v546_v9 = vld [vmem:[#allocation2 + $0x6] sm:$0x3] }
  0xf8   :  { %914 = vtanh.f32 %v319_v21  ;;  %v750_v23 = vmul.f32 -1.442695, %v319_v21 }
  0xfa   :  { %916 = vpow2.f32 %v750_v23  ;;  %v650_v23 = vld [vmem:[%s1324_s4 + $0x18] sm:$0xff] }
 0x105   :  { %v915_v22 = vpop.eup %914 }
 0x106   :  { %329 = vrot.lane.b32.xlu0 %v915_v22, %s970_s20 }
 0x107   :  { %v917_v24 = vpop.eup %916 }
 0x108   :  { %v323_v25 = vadd.f32 1.0, %v917_v24  ;;  %v649_v24 = vld [vmem:[%s1324_s4 + $0x10] sm:$0xff] }
 0x10a   :  { %918 = vrcp.f32 %v323_v25  ;;  %v648_v25 = vld [vmem:[%s1324_s4 + $0x8] sm:$0xff] }
 0x117   :  { %v919_v26 = vpop.eup %918 }
 0x118   :  { %v327_v29 = vmul.f32 0.0, %v919_v26 }
 0x178   :  { %v330_v27 = vpop.permute.xlu0 %329 }
 0x179   :  { %v332_v28 = vmul.f32 %v919_v26, %v330_v27 }
 0x17b   :  { %334 = vrot.lane.b32.xlu0 %v332_v28, %s971_s2 }
 0x1ed   :  { %v335_v30 = vpop.permute.xlu0 %334 }
 0x1ee   :  { %v337_v31 = vadd.f32 %v335_v30, %v327_v29 }
 0x1f0   :  { %920 = vtanh.f32 %v337_v31 }
 0x1fd   :  { %v921_v32 = vpop.eup %920 }
 0x1fe   :  { %340 = vrot.lane.b32.xlu1 %v921_v32, %s970_s20 }
 0x270   :  { %v341_v33 = vpop.permute.xlu1 %340 }
 0x271   :  { %v343_v34 = vmul.f32 %v919_v26, %v341_v33  ;;  %v647_v26 = vld [vmem:[%s1324_s4] sm:$0xff]  ;;  %s741_s4 = sshll.u32 %s972_s7, 4  ;;  %s742_s4 = int_to_ptr.vmem [resolvable:$true] %s741_s4 }
 0x272   :  { %s946_s8 = scalar_lea.vmem %s742_s4, 32  ;;  %p951_p1 = scmp.lt.s32.totalorder %s742_s4, %s742_s4 }
 0x273   :  { %346 = vrot.lane.b32.xlu1 %v343_v34, %s971_s2  ;;  %p947_p0 = scmp.ne.s32.totalorder %s742_s4, %s946_s8  ;;  %p952_p2 = scmp.lt.s32.totalorder %s946_s8, %s946_s8 }
 0x275   :  { %p953_p3 = por %p952_p2, %p951_p1 }
 0x277   :  { %p954_p4 = pnand %p953_p3, %p947_p0 }
 0x2e5   :  { %v347_v35 = vpop.permute.xlu1 %346 }
 0x2e6   :  { %874 = vmatmul.mubr.msk.f32.vlgmr.msra.gmra.mxu1 %vm245_vm1, %v347_v35 }
 0x2e7   :  { %888 = vmatpush3.msra.mxu1 %v1215_v4  ;;  %895 = vmatprep.mubr.msk.f32.mxu1 %vm969_vm0, %v968_v5 }
 0x2e8   :  { %889 = vmatprep.subr.mxu1 %v968_v5 }
 0x2e9   :  { %890 = vmatpush3.msra.mxu1 %v1221_v6 }
 0x2ea   :  { %891 = vmatprep.subr.mxu1 %v968_v5 }
 0x2eb   :  { %892 = vmatpush3.msra.mxu1 %v1231_v7 }
 0x2ec   :  { %893 = vmatprep.subr.mxu1 %v968_v5 }
 0x2ed   :  { %894 = vmatpush3.msra.mxu1 %v1240_v8 }
 0x3a6   :  { %v416_v37 = vpop.f32.mrf.mxu1 }
 0x3a7   :  { %v420_v38 = vadd.f32 %v416_v37, %v344_v36 }
 0x3a8   :  { %v875_v39 = vpop.f32.mrf.mxu1 }
 0x3a9   :  { %922 = vtanh.f32 %v420_v38  ;;  %v752_v41 = vmul.f32 -1.442695, %v420_v38 }
 0x3ab   :  { %924 = vpow2.f32 %v752_v41 }
 0x3b6   :  { %v923_v40 = vpop.eup %922 }
 0x3b7   :  { %430 = vrot.lane.b32.xlu0 %v923_v40, %s970_s20 }
 0x3b8   :  { %v925_v42 = vpop.eup %924 }
 0x3b9   :  { %v424_v43 = vadd.f32 1.0, %v925_v42 }
 0x3bb   :  { %926 = vrcp.f32 %v424_v43 }
 0x3c8   :  { %v927_v44 = vpop.eup %926 }
 0x3c9   :  { %v428_v47 = vmul.f32 %v927_v44, %v337_v31  ;;  %v757_v31 = vld [vmem:[%s1325_s5] ss:$0 sm:$0xff] }
 0x429   :  { %v431_v45 = vpop.permute.xlu0 %430 }
 0x42a   :  { %v433_v46 = vmul.f32 %v927_v44, %v431_v45 }
 0x42c   :  { %435 = vrot.lane.b32.xlu1 %v433_v46, %s971_s2 }
 0x49e   :  { %v436_v48 = vpop.permute.xlu1 %435 }
 0x49f   :  { %v438_v49 = vadd.f32 %v436_v48, %v428_v47 }
 0x4a1   :  { %928 = vtanh.f32 %v438_v49 }
 0x4ae   :  { %v929_v50 = vpop.eup %928 }
 0x4af   :  { %441 = vrot.lane.b32.xlu0 %v929_v50, %s970_s20 }
 0x521   :  { %v442_v51 = vpop.permute.xlu0 %441 }
 0x522   :  { %v444_v52 = vmul.f32 %v927_v44, %v442_v51 }
 0x524   :  { %447 = vrot.lane.b32.xlu1 %v444_v52, %s971_s2 }
 0x596   :  { %v448_v53 = vpop.permute.xlu1 %447 }
 0x597   :  { %885 = vmatmul.mubr.msk.f32.vlgmr.msra.gmra.mxu0 %vm245_vm1, %v448_v53 }
 0x598   :  { %906 = vmatprep.mubr.msk.f32.mxu0 %vm969_vm0, %v968_v5  ;;  %899 = vmatpush3.msra.mxu0 %v650_v23 }
 0x599   :  { %900 = vmatprep.subr.mxu0 %v968_v5 }
 0x59a   :  { %901 = vmatpush3.msra.mxu0 %v649_v24 }
 0x59b   :  { %902 = vmatprep.subr.mxu0 %v968_v5 }
 0x59c   :  { %903 = vmatpush3.msra.mxu0 %v648_v25 }
 0x59d   :  { %904 = vmatprep.subr.mxu0 %v968_v5 }
 0x59e   :  { %905 = vmatpush3.msra.mxu0 %v647_v26 }
 0x657   :  { %v517_v55 = vpop.f32.mrf.mxu0 }
 0x658   :  { %v521_v56 = vadd.f32 %v517_v55, %v445_v54 }
 0x659   :  { %v886_v57 = vpop.f32.mrf.mxu0 }
 0x65a   :  { %930 = vtanh.f32 %v521_v56  ;;  %v754_v59 = vmul.f32 -1.442695, %v521_v56 }
 0x65c   :  { %932 = vpow2.f32 %v754_v59 }
 0x667   :  { %v931_v58 = vpop.eup %930 }
 0x668   :  { %531 = vrot.lane.b32.xlu0 %v931_v58, %s970_s20 }
 0x669   :  { %v933_v60 = vpop.eup %932 }
 0x66a   :  { %v525_v61 = vadd.f32 1.0, %v933_v60 }
 0x66c   :  { %934 = vrcp.f32 %v525_v61 }
 0x679   :  { %v935_v62 = vpop.eup %934 }
 0x67a   :  { %v529_v1 = vmul.f32 %v935_v62, %v438_v49 }
 0x6da   :  { %v532_v63 = vpop.permute.xlu0 %531 }
 0x6db   :  { %v534_v0 = vmul.f32 %v935_v62, %v532_v63 }
 0x6dd   :  { %536 = vrot.lane.b32.xlu1 %v534_v0, %s971_s2 }
 0x74f   :  { %v537_v2 = vpop.permute.xlu1 %536 }
 0x750   :  { %v539_v3 = vadd.f32 %v537_v2, %v529_v1 }
 0x752   :  { %936 = vtanh.f32 %v539_v3 }
 0x75f   :  { %v937_v4 = vpop.eup %936 }
 0x760   :  { %542 = vrot.lane.b32.xlu0 %v937_v4, %s970_s20 }
 0x7d2   :  { %v543_v6 = vpop.permute.xlu0 %542 }
 0x7d3   :  { %v545_v7 = vmul.f32 %v935_v62, %v543_v6 }
 0x7d5   :  { %548 = vrot.lane.b32.xlu1 %v545_v7, %s971_s2 }
 0x847   :  { %v549_v8 = vpop.permute.xlu1 %548 }
 0x848   :  { %896 = vmatmul.mubr.msk.f32.vlgmr.msra.gmra.mxu1 %vm245_vm1, %v549_v8 }
 0x908   :  { %v618_v10 = vpop.f32.mrf.mxu1 }
 0x909   :  { %v622_v11 = vadd.f32 %v618_v10, %v546_v9 }
 0x90a   :  { %v897_v12 = vpop.f32.mrf.mxu1 }
 0x90b   :  { %938 = vtanh.f32 %v622_v11  ;;  %v756_v14 = vmul.f32 -1.442695, %v622_v11 }
 0x90d   :  { %940 = vpow2.f32 %v756_v14 }
 0x918   :  { %v939_v13 = vpop.eup %938 }
 0x919   :  { %632 = vrot.lane.b32.xlu0 %v939_v13, %s970_s20 }
 0x91a   :  { %v941_v15 = vpop.eup %940 }
 0x91b   :  { %v626_v16 = vadd.f32 1.0, %v941_v15 }
 0x91d   :  { %942 = vrcp.f32 %v626_v16 }
 0x92a   :  { %v943_v17 = vpop.eup %942 }
 0x92b   :  { %v630_v20 = vmul.f32 %v943_v17, %v539_v3 }
 0x98b   :  { %v633_v18 = vpop.permute.xlu0 %632 }
 0x98c   :  { %v635_v19 = vmul.f32 %v943_v17, %v633_v18 }
 0x98e   :  { %637 = vrot.lane.b32.xlu1 %v635_v19, %s971_s2 }
 0xa00   :  { %v638_v21 = vpop.permute.xlu1 %637 }
 0xa01   :  { %v640_v22 = vadd.f32 %v638_v21, %v630_v20 }
 0xa03   :  { %944 = vtanh.f32 %v640_v22 }
 0xa10   :  { %v945_v27 = vpop.eup %944 }
 0xa11   :  { %643 = vrot.lane.b32.xlu0 %v945_v27, %s970_s20 }
 0xa83   :  { %v644_v28 = vpop.permute.xlu0 %643 }
 0xa84   :  { %v646_v29 = vmul.f32 %v943_v17, %v644_v28 }
 0xa86   :  { %659 = vrot.lane.b32.xlu1 %v646_v29, %s971_s2 }
 0xaf8   :  { %v660_v30 = vpop.permute.xlu1 %659 }
 0xaf9   :  { %907 = vmatmul.mubr.msk.f32.vlgmr.msra.gmra.mxu0 %vm245_vm1, %v660_v30 }
 0xbb9   :  { %v729_v32 = vpop.f32.mrf.mxu0 }
 0xbba   :  { %v730_v5 = vadd.f32 %v757_v31, %v729_v32 }
 0xbbb   :  { %v908_v33 = vpop.f32.mrf.mxu0 }
 0xbbc   :  { %734 = vst.msk [vmem:[#allocation3] sm:$0x3] %vm733_vm2, %v730_v5 }
 0xbbd   :  { %957 = shalt.err (!%p954_p4)
}
 0xbbe   :  { %744 = dma.vmem_to_hbm [thread:$0]  %s742_s4, 32, %s1326_s6, [#allocation4]  }
 0xbbf   :  { %966 = dma.done.wait [#allocation4], 32  }
 0xbc0   :  { %967 = vsyncadd [#allocation4], 4294967264 }
 0xbc1   :  { %748 = vsyncpa [#allocation4], 1 }

</bundles_post_ra>
